<compile_context>
chip_gen: v6e
topology: v6e:2x2x1
jax: 0.10.0
libtpu: 0.0.40
codegen_flags: <defaults>
</compile_context>

<pallas_src>
import jax
import jax.numpy as jnp
from jax.experimental import pallas as pl
from jax.experimental.pallas import tpu as pltpu

BN_EPS = 1e-5


def _relu(x):
    return jnp.maximum(x, 0.0)


def advanced_regressor_kernel(x_ref, *refs):
    """refs = (w0, b0, ..., w10, b10, o_ref).

    Weights are bf16 (in, out); biases are f32 (1, out); x_ref is f32
    (tb, 600); o_ref is f32 (tb, 2).
    Fused-layer order:
      0: fe0 600->512 (BN folded)      6: gap_attention[1] 128(pad)->128
      1: fe1 512->256 (BN folded)      7: gap_head[0] 128->128 (BN folded)
      2: fe2 256->128 (BN folded)      8: gap_head[1] 128->64  (BN folded)
      3: [L_head[0] | attn[0]] 128->128 (fused)
      4: L_head[1] 128(pad)->32        9: gap_head[2] 64->32
      5: L_head[2] 32->2 (lane 0)     10: gap_head[3] 32->2 (lane 1)
    """
    o_ref = refs[-1]
    p = refs[:-1]

    def lin(h_bf16, i):
        # h is already bf16; bf16 MXU matmul with f32 accumulation.
        w = p[2 * i][...]
        b = p[2 * i + 1][...]
        return jnp.dot(h_bf16, w, preferred_element_type=jnp.float32) + b

    # --- feature_extractor (BN folded, dropout = identity) ---
    x = x_ref[...].astype(jnp.bfloat16)
    h = _relu(lin(x, 0)).astype(jnp.bfloat16)
    h = _relu(lin(h, 1)).astype(jnp.bfloat16)
    features_f32 = _relu(lin(h, 2))                 # (tb, 128) f32, reused below
    features = features_f32.astype(jnp.bfloat16)

    # --- fused L_ecran_head[0] + gap_attention[0] (both consume features) ---
    la = lin(features, 3)                           # (tb, 128) f32
    # Full-width activations (no 64-lane split); the unused halves are killed
    # by zero rows in the K-padded downstream weights.
    l = _relu(la).astype(jnp.bfloat16)              # L_ecran branch lives in :64
    a = jnp.tanh(la).astype(jnp.bfloat16)           # attention branch lives in 64:

    # --- L_ecran_head tail ---
    l = _relu(lin(l, 4)).astype(jnp.bfloat16)       # 128(pad) -> 32

    # --- gap_attention tail + attended features ---
    att = jax.nn.sigmoid(lin(a, 6))                 # 128(pad) -> 128, f32
    attended = (features_f32 * att).astype(jnp.bfloat16)

    # --- gap_head (BN folded) ---
    g = _relu(lin(attended, 7)).astype(jnp.bfloat16)
    g = _relu(lin(g, 8)).astype(jnp.bfloat16)
    g = _relu(lin(g, 9)).astype(jnp.bfloat16)

    # torch.cat([L_ecran, gap], dim=1): the two 32->1 heads are lane-padded to
    # (32, 2) in disjoint lanes, so their sum is the final output directly.
    o_ref[...] = lin(l, 5) + lin(g, 10)


def init_params(key, input_size=600):
    """Deterministic init matching the module's _init_weights.

    Linear: kaiming_normal_(mode='fan_out', relu) -> std = sqrt(2/out_features),
    bias = 0.  BatchNorm1d (default stats, eval mode) folds to
    scale = 1/sqrt(1+eps), shift = 0 on the preceding Linear.  Weights are
    returned pre-transposed to (in, out) in bf16; biases as (1, out) f32.
    L_ecran_head[0] / gap_attention[0] are fused into one (128, 128) weight;
    their consumers are K-padded to 128; the two 32->1 output heads are
    lane-padded to (32, 2).
    """
    layer_dims = [
        (input_size, 512, True),   # feature_extractor
        (512, 256, True),
        (256, 128, True),
        (128, 64, False),          # L_ecran_head[0]
        (64, 32, False),           # L_ecran_head[1]
        (32, 1, False),            # L_ecran_head[2]
        (128, 64, False),          # gap_attention[0]
        (64, 128, False),          # gap_attention[1]
        (128, 128, True),          # gap_head[0]
        (128, 64, True),           # gap_head[1]
        (64, 32, False),           # gap_head[2]
        (32, 1, False),            # gap_head[3]
    ]
    keys = jax.random.split(key, len(layer_dims))
    raw = []
    for (fin, fout, has_bn), k in zip(layer_dims, keys):
        std = jnp.sqrt(2.0 / fout)
        w = std * jax.random.normal(k, (fout, fin), dtype=jnp.float32)  # (out, in)
        b = jnp.zeros((fout,), dtype=jnp.float32)
        if has_bn:
            s = 1.0 / jnp.sqrt(1.0 + BN_EPS)
            w = w * s
            b = b * s
        raw.append((jnp.asarray(w.T), b.reshape(1, fout)))  # (in, out), (1, out)

    def pad_k(wb, new_k, row_offset):
        """Zero-pad the input (K) dim; extra rows contribute exactly zero."""
        w, b = wb
        wp = jnp.zeros((new_k, w.shape[1]), jnp.float32)
        wp = wp.at[row_offset:row_offset + w.shape[0]].set(w)
        return wp, b

    def pad_out(wb, new_n, col_offset):
        """Zero-pad the output (N) dim into a chosen lane slot."""
        w, b = wb
        wp = jnp.zeros((w.shape[0], new_n), jnp.float32)
        wp = wp.at[:, col_offset:col_offset + w.shape[1]].set(w)
        bp = jnp.zeros((1, new_n), jnp.float32)
        bp = bp.at[:, col_offset:col_offset + b.shape[1]].set(b)
        return wp, bp

    # Fuse L_ecran_head[0] (idx 3) and gap_attention[0] (idx 6): same input.
    w3, b3 = raw[3]
    w6, b6 = raw[6]
    fused = (jnp.concatenate([w3, w6], axis=1), jnp.concatenate([b3, b6], axis=1))

    # K-pad the consumers of the fused 128-wide output (no 64-lane slicing).
    l_head1 = pad_k(raw[4], 128, 0)    # rows 64:128 zero -> tanh half ignored
    attn1 = pad_k(raw[7], 128, 64)     # rows 0:64  zero -> relu half ignored

    # Lane-pad the two 32->1 output heads into disjoint lanes of a (32, 2) out.
    l_head2 = pad_out(raw[5], 2, 0)    # L_ecran in lane 0
    gap_head3 = pad_out(raw[11], 2, 1)  # gap in lane 1

    ordered = [raw[0], raw[1], raw[2], fused, l_head1, l_head2, attn1,
               raw[8], raw[9], raw[10], gap_head3]
    # Weights bf16 for the MXU path; biases stay f32.
    return [(w.astype(jnp.bfloat16), b) for w, b in ordered]


def advanced_regressor(x, params, *, block_b=512):
    """x: (B, input_size) f32 -> (B, 2) f32."""
    B, F = x.shape
    assert F == params[0][0].shape[0], "input width must match first weight"

    if B <= block_b:
        tb = B                              # single full-array block
    else:
        tb = max(16, (block_b // 16) * 16)  # multiple of 16 (sublane packing)
    grid = pl.cdiv(B, tb)                   # no batch padding; tail rows are
                                            # undefined but never written back.

    flat = [t for wb in params for t in wb]

    # x / out are batch-tiled and auto-pipelined; every weight/bias gets a
    # constant index_map so it is DMA'd once and stays VMEM-resident.
    in_specs = [pl.BlockSpec((tb, F), lambda i: (i, 0))]
    for t in flat:
        in_specs.append(pl.BlockSpec(t.shape, lambda i: (0, 0)))

    out = pl.pallas_call(
        advanced_regressor_kernel,
        grid=(grid,),
        out_shape=jax.ShapeDtypeStruct((B, 2), jnp.float32),
        in_specs=in_specs,
        out_specs=pl.BlockSpec((tb, 2), lambda i: (i, 0)),
        compiler_params=pltpu.CompilerParams(
            dimension_semantics=("parallel",)),
    )(x, *flat)
    return out


if __name__ == "__main__":
    key = jax.random.PRNGKey(0)
    kx, kp = jax.random.split(key)

    B, INPUT_SIZE = 20, 600
    x = jax.random.normal(kx, (B, INPUT_SIZE), dtype=jnp.float32)
    params = init_params(kp, INPUT_SIZE)

    # Small batch tile so the test exercises a multi-step grid + a ragged
    # (undefined) tail block.
    out = advanced_regressor(x, params, block_b=16)
    out = jax.block_until_ready(out)
    assert out.shape == (B, 2) and out.dtype == jnp.float32
    assert bool(jnp.all(jnp.isfinite(out)))
    print("KERNEL_OK")
</pallas_src>

<mosaic_0001>
module attributes {stable_mosaic.version = 11 : i64} {
  func.func @advanced_regressor_kernel(%arg0: i32, %arg1: memref<16x600xf32, #tpu.memory_space<vmem>>, %arg2: memref<600x512xbf16, #tpu.memory_space<vmem>>, %arg3: memref<1x512xf32, #tpu.memory_space<vmem>>, %arg4: memref<512x256xbf16, #tpu.memory_space<vmem>>, %arg5: memref<1x256xf32, #tpu.memory_space<vmem>>, %arg6: memref<256x128xbf16, #tpu.memory_space<vmem>>, %arg7: memref<1x128xf32, #tpu.memory_space<vmem>>, %arg8: memref<128x128xbf16, #tpu.memory_space<vmem>>, %arg9: memref<1x128xf32, #tpu.memory_space<vmem>>, %arg10: memref<128x32xbf16, #tpu.memory_space<vmem>>, %arg11: memref<1x32xf32, #tpu.memory_space<vmem>>, %arg12: memref<32x2xbf16, #tpu.memory_space<vmem>>, %arg13: memref<1x2xf32, #tpu.memory_space<vmem>>, %arg14: memref<128x128xbf16, #tpu.memory_space<vmem>>, %arg15: memref<1x128xf32, #tpu.memory_space<vmem>>, %arg16: memref<128x128xbf16, #tpu.memory_space<vmem>>, %arg17: memref<1x128xf32, #tpu.memory_space<vmem>>, %arg18: memref<128x64xbf16, #tpu.memory_space<vmem>>, %arg19: memref<1x64xf32, #tpu.memory_space<vmem>>, %arg20: memref<64x32xbf16, #tpu.memory_space<vmem>>, %arg21: memref<1x32xf32, #tpu.memory_space<vmem>>, %arg22: memref<32x2xbf16, #tpu.memory_space<vmem>>, %arg23: memref<1x2xf32, #tpu.memory_space<vmem>>, %arg24: memref<16x2xf32, #tpu.memory_space<vmem>>) attributes {dimension_semantics = [#tpu.dimension_semantics<parallel>], iteration_bounds = array<i64: 2>, scalar_prefetch = 0 : i64, scratch_operands = 0 : i64, tpu.core_type = #tpu.core_type<tc>, window_params = [{transform_indices = @transform_0, window_bounds = array<i64: 16, 600>}, {pipeline_mode = #tpu.pipeline_mode<synchronous>, transform_indices = @transform_1, window_bounds = array<i64: 600, 512>}, {pipeline_mode = #tpu.pipeline_mode<synchronous>, transform_indices = @transform_2, window_bounds = array<i64: 1, 512>}, {pipeline_mode = #tpu.pipeline_mode<synchronous>, transform_indices = @transform_3, window_bounds = array<i64: 512, 256>}, {pipeline_mode = #tpu.pipeline_mode<synchronous>, transform_indices = @transform_4, window_bounds = array<i64: 1, 256>}, {pipeline_mode = #tpu.pipeline_mode<synchronous>, transform_indices = @transform_5, window_bounds = array<i64: 256, 128>}, {pipeline_mode = #tpu.pipeline_mode<synchronous>, transform_indices = @transform_6, window_bounds = array<i64: 1, 128>}, {pipeline_mode = #tpu.pipeline_mode<synchronous>, transform_indices = @transform_7, window_bounds = array<i64: 128, 128>}, {pipeline_mode = #tpu.pipeline_mode<synchronous>, transform_indices = @transform_8, window_bounds = array<i64: 1, 128>}, {pipeline_mode = #tpu.pipeline_mode<synchronous>, transform_indices = @transform_9, window_bounds = array<i64: 128, 32>}, {pipeline_mode = #tpu.pipeline_mode<synchronous>, transform_indices = @transform_10, window_bounds = array<i64: 1, 32>}, {pipeline_mode = #tpu.pipeline_mode<synchronous>, transform_indices = @transform_11, window_bounds = array<i64: 32, 2>}, {pipeline_mode = #tpu.pipeline_mode<synchronous>, transform_indices = @transform_12, window_bounds = array<i64: 1, 2>}, {pipeline_mode = #tpu.pipeline_mode<synchronous>, transform_indices = @transform_13, window_bounds = array<i64: 128, 128>}, {pipeline_mode = #tpu.pipeline_mode<synchronous>, transform_indices = @transform_14, window_bounds = array<i64: 1, 128>}, {pipeline_mode = #tpu.pipeline_mode<synchronous>, transform_indices = @transform_15, window_bounds = array<i64: 128, 128>}, {pipeline_mode = #tpu.pipeline_mode<synchronous>, transform_indices = @transform_16, window_bounds = array<i64: 1, 128>}, {pipeline_mode = #tpu.pipeline_mode<synchronous>, transform_indices = @transform_17, window_bounds = array<i64: 128, 64>}, {pipeline_mode = #tpu.pipeline_mode<synchronous>, transform_indices = @transform_18, window_bounds = array<i64: 1, 64>}, {pipeline_mode = #tpu.pipeline_mode<synchronous>, transform_indices = @transform_19, window_bounds = array<i64: 64, 32>}, {pipeline_mode = #tpu.pipeline_mode<synchronous>, transform_indices = @transform_20, window_bounds = array<i64: 1, 32>}, {pipeline_mode = #tpu.pipeline_mode<synchronous>, transform_indices = @transform_21, window_bounds = array<i64: 32, 2>}, {pipeline_mode = #tpu.pipeline_mode<synchronous>, transform_indices = @transform_22, window_bounds = array<i64: 1, 2>}, {transform_indices = @transform_23, window_bounds = array<i64: 16, 2>}]} {
    %c0 = arith.constant 0 : index
    %c0_0 = arith.constant 0 : index
    %0 = vector.load %arg1[%c0, %c0_0] : memref<16x600xf32, #tpu.memory_space<vmem>>, vector<16x600xf32>
    %1 = arith.truncf %0 : vector<16x600xf32> to vector<16x600xbf16>
    %c0_1 = arith.constant 0 : index
    %c0_2 = arith.constant 0 : index
    %2 = vector.load %arg2[%c0_1, %c0_2] : memref<600x512xbf16, #tpu.memory_space<vmem>>, vector<600x512xbf16>
    %c0_3 = arith.constant 0 : index
    %c0_4 = arith.constant 0 : index
    %3 = vector.load %arg3[%c0_3, %c0_4] : memref<1x512xf32, #tpu.memory_space<vmem>>, vector<1x512xf32>
    %cst = arith.constant dense<0.000000e+00> : vector<16x512xf32>
    %4 = tpu.matmul %1, %2, %cst {dimension_numbers = #tpu.dot_dimension_numbers<[1], [0], [0], [1], [0, 0, 1, 1], [], []>} : vector<16x600xbf16>, vector<600x512xbf16>, vector<16x512xf32> -> vector<16x512xf32>
    %5 = vector.broadcast %3 : vector<1x512xf32> to vector<16x512xf32>
    %6 = arith.addf %4, %5 : vector<16x512xf32>
    %cst_5 = arith.constant 0.000000e+00 : f32
    %7 = vector.broadcast %cst_5 : f32 to vector<16x512xf32>
    %8 = arith.maximumf %6, %7 : vector<16x512xf32>
    %9 = arith.truncf %8 : vector<16x512xf32> to vector<16x512xbf16>
    %c0_6 = arith.constant 0 : index
    %c0_7 = arith.constant 0 : index
    %10 = vector.load %arg4[%c0_6, %c0_7] : memref<512x256xbf16, #tpu.memory_space<vmem>>, vector<512x256xbf16>
    %c0_8 = arith.constant 0 : index
    %c0_9 = arith.constant 0 : index
    %11 = vector.load %arg5[%c0_8, %c0_9] : memref<1x256xf32, #tpu.memory_space<vmem>>, vector<1x256xf32>
    %cst_10 = arith.constant dense<0.000000e+00> : vector<16x256xf32>
    %12 = tpu.matmul %9, %10, %cst_10 {dimension_numbers = #tpu.dot_dimension_numbers<[1], [0], [0], [1], [0, 0, 1, 1], [], []>} : vector<16x512xbf16>, vector<512x256xbf16>, vector<16x256xf32> -> vector<16x256xf32>
    %13 = vector.broadcast %11 : vector<1x256xf32> to vector<16x256xf32>
    %14 = arith.addf %12, %13 : vector<16x256xf32>
    %cst_11 = arith.constant 0.000000e+00 : f32
    %15 = vector.broadcast %cst_11 : f32 to vector<16x256xf32>
    %16 = arith.maximumf %14, %15 : vector<16x256xf32>
    %17 = arith.truncf %16 : vector<16x256xf32> to vector<16x256xbf16>
    %c0_12 = arith.constant 0 : index
    %c0_13 = arith.constant 0 : index
    %18 = vector.load %arg6[%c0_12, %c0_13] : memref<256x128xbf16, #tpu.memory_space<vmem>>, vector<256x128xbf16>
    %c0_14 = arith.constant 0 : index
    %c0_15 = arith.constant 0 : index
    %19 = vector.load %arg7[%c0_14, %c0_15] : memref<1x128xf32, #tpu.memory_space<vmem>>, vector<1x128xf32>
    %cst_16 = arith.constant dense<0.000000e+00> : vector<16x128xf32>
    %20 = tpu.matmul %17, %18, %cst_16 {dimension_numbers = #tpu.dot_dimension_numbers<[1], [0], [0], [1], [0, 0, 1, 1], [], []>} : vector<16x256xbf16>, vector<256x128xbf16>, vector<16x128xf32> -> vector<16x128xf32>
    %21 = vector.broadcast %19 : vector<1x128xf32> to vector<16x128xf32>
    %22 = arith.addf %20, %21 : vector<16x128xf32>
    %cst_17 = arith.constant 0.000000e+00 : f32
    %23 = vector.broadcast %cst_17 : f32 to vector<16x128xf32>
    %24 = arith.maximumf %22, %23 : vector<16x128xf32>
    %25 = arith.truncf %24 : vector<16x128xf32> to vector<16x128xbf16>
    %c0_18 = arith.constant 0 : index
    %c0_19 = arith.constant 0 : index
    %26 = vector.load %arg8[%c0_18, %c0_19] : memref<128x128xbf16, #tpu.memory_space<vmem>>, vector<128x128xbf16>
    %c0_20 = arith.constant 0 : index
    %c0_21 = arith.constant 0 : index
    %27 = vector.load %arg9[%c0_20, %c0_21] : memref<1x128xf32, #tpu.memory_space<vmem>>, vector<1x128xf32>
    %cst_22 = arith.constant dense<0.000000e+00> : vector<16x128xf32>
    %28 = tpu.matmul %25, %26, %cst_22 {dimension_numbers = #tpu.dot_dimension_numbers<[1], [0], [0], [1], [0, 0, 1, 1], [], []>} : vector<16x128xbf16>, vector<128x128xbf16>, vector<16x128xf32> -> vector<16x128xf32>
    %29 = vector.broadcast %27 : vector<1x128xf32> to vector<16x128xf32>
    %30 = arith.addf %28, %29 : vector<16x128xf32>
    %cst_23 = arith.constant 0.000000e+00 : f32
    %31 = vector.broadcast %cst_23 : f32 to vector<16x128xf32>
    %32 = arith.maximumf %30, %31 : vector<16x128xf32>
    %33 = arith.truncf %32 : vector<16x128xf32> to vector<16x128xbf16>
    %34 = math.tanh %30 : vector<16x128xf32>
    %35 = arith.truncf %34 : vector<16x128xf32> to vector<16x128xbf16>
    %c0_24 = arith.constant 0 : index
    %c0_25 = arith.constant 0 : index
    %36 = vector.load %arg10[%c0_24, %c0_25] : memref<128x32xbf16, #tpu.memory_space<vmem>>, vector<128x32xbf16>
    %c0_26 = arith.constant 0 : index
    %c0_27 = arith.constant 0 : index
    %37 = vector.load %arg11[%c0_26, %c0_27] : memref<1x32xf32, #tpu.memory_space<vmem>>, vector<1x32xf32>
    %cst_28 = arith.constant dense<0.000000e+00> : vector<16x32xf32>
    %38 = tpu.matmul %33, %36, %cst_28 {dimension_numbers = #tpu.dot_dimension_numbers<[1], [0], [0], [1], [0, 0, 1, 1], [], []>} : vector<16x128xbf16>, vector<128x32xbf16>, vector<16x32xf32> -> vector<16x32xf32>
    %39 = vector.broadcast %37 : vector<1x32xf32> to vector<16x32xf32>
    %40 = arith.addf %38, %39 : vector<16x32xf32>
    %cst_29 = arith.constant 0.000000e+00 : f32
    %41 = vector.broadcast %cst_29 : f32 to vector<16x32xf32>
    %42 = arith.maximumf %40, %41 : vector<16x32xf32>
    %43 = arith.truncf %42 : vector<16x32xf32> to vector<16x32xbf16>
    %c0_30 = arith.constant 0 : index
    %c0_31 = arith.constant 0 : index
    %44 = vector.load %arg14[%c0_30, %c0_31] : memref<128x128xbf16, #tpu.memory_space<vmem>>, vector<128x128xbf16>
    %c0_32 = arith.constant 0 : index
    %c0_33 = arith.constant 0 : index
    %45 = vector.load %arg15[%c0_32, %c0_33] : memref<1x128xf32, #tpu.memory_space<vmem>>, vector<1x128xf32>
    %cst_34 = arith.constant dense<0.000000e+00> : vector<16x128xf32>
    %46 = tpu.matmul %35, %44, %cst_34 {dimension_numbers = #tpu.dot_dimension_numbers<[1], [0], [0], [1], [0, 0, 1, 1], [], []>} : vector<16x128xbf16>, vector<128x128xbf16>, vector<16x128xf32> -> vector<16x128xf32>
    %47 = vector.broadcast %45 : vector<1x128xf32> to vector<16x128xf32>
    %48 = arith.addf %46, %47 : vector<16x128xf32>
    %49 = arith.negf %48 : vector<16x128xf32>
    %50 = math.exp %49 : vector<16x128xf32>
    %cst_35 = arith.constant 1.000000e+00 : f32
    %51 = vector.broadcast %cst_35 : f32 to vector<16x128xf32>
    %52 = arith.addf %51, %50 : vector<16x128xf32>
    %53 = arith.divf %51, %52 : vector<16x128xf32>
    %54 = arith.mulf %24, %53 : vector<16x128xf32>
    %55 = arith.truncf %54 : vector<16x128xf32> to vector<16x128xbf16>
    %c0_36 = arith.constant 0 : index
    %c0_37 = arith.constant 0 : index
    %56 = vector.load %arg16[%c0_36, %c0_37] : memref<128x128xbf16, #tpu.memory_space<vmem>>, vector<128x128xbf16>
    %c0_38 = arith.constant 0 : index
    %c0_39 = arith.constant 0 : index
    %57 = vector.load %arg17[%c0_38, %c0_39] : memref<1x128xf32, #tpu.memory_space<vmem>>, vector<1x128xf32>
    %cst_40 = arith.constant dense<0.000000e+00> : vector<16x128xf32>
    %58 = tpu.matmul %55, %56, %cst_40 {dimension_numbers = #tpu.dot_dimension_numbers<[1], [0], [0], [1], [0, 0, 1, 1], [], []>} : vector<16x128xbf16>, vector<128x128xbf16>, vector<16x128xf32> -> vector<16x128xf32>
    %59 = vector.broadcast %57 : vector<1x128xf32> to vector<16x128xf32>
    %60 = arith.addf %58, %59 : vector<16x128xf32>
    %cst_41 = arith.constant 0.000000e+00 : f32
    %61 = vector.broadcast %cst_41 : f32 to vector<16x128xf32>
    %62 = arith.maximumf %60, %61 : vector<16x128xf32>
    %63 = arith.truncf %62 : vector<16x128xf32> to vector<16x128xbf16>
    %c0_42 = arith.constant 0 : index
    %c0_43 = arith.constant 0 : index
    %64 = vector.load %arg18[%c0_42, %c0_43] : memref<128x64xbf16, #tpu.memory_space<vmem>>, vector<128x64xbf16>
    %c0_44 = arith.constant 0 : index
    %c0_45 = arith.constant 0 : index
    %65 = vector.load %arg19[%c0_44, %c0_45] : memref<1x64xf32, #tpu.memory_space<vmem>>, vector<1x64xf32>
    %cst_46 = arith.constant dense<0.000000e+00> : vector<16x64xf32>
    %66 = tpu.matmul %63, %64, %cst_46 {dimension_numbers = #tpu.dot_dimension_numbers<[1], [0], [0], [1], [0, 0, 1, 1], [], []>} : vector<16x128xbf16>, vector<128x64xbf16>, vector<16x64xf32> -> vector<16x64xf32>
    %67 = vector.broadcast %65 : vector<1x64xf32> to vector<16x64xf32>
    %68 = arith.addf %66, %67 : vector<16x64xf32>
    %cst_47 = arith.constant 0.000000e+00 : f32
    %69 = vector.broadcast %cst_47 : f32 to vector<16x64xf32>
    %70 = arith.maximumf %68, %69 : vector<16x64xf32>
    %71 = arith.truncf %70 : vector<16x64xf32> to vector<16x64xbf16>
    %c0_48 = arith.constant 0 : index
    %c0_49 = arith.constant 0 : index
    %72 = vector.load %arg20[%c0_48, %c0_49] : memref<64x32xbf16, #tpu.memory_space<vmem>>, vector<64x32xbf16>
    %c0_50 = arith.constant 0 : index
    %c0_51 = arith.constant 0 : index
    %73 = vector.load %arg21[%c0_50, %c0_51] : memref<1x32xf32, #tpu.memory_space<vmem>>, vector<1x32xf32>
    %cst_52 = arith.constant dense<0.000000e+00> : vector<16x32xf32>
    %74 = tpu.matmul %71, %72, %cst_52 {dimension_numbers = #tpu.dot_dimension_numbers<[1], [0], [0], [1], [0, 0, 1, 1], [], []>} : vector<16x64xbf16>, vector<64x32xbf16>, vector<16x32xf32> -> vector<16x32xf32>
    %75 = vector.broadcast %73 : vector<1x32xf32> to vector<16x32xf32>
    %76 = arith.addf %74, %75 : vector<16x32xf32>
    %cst_53 = arith.constant 0.000000e+00 : f32
    %77 = vector.broadcast %cst_53 : f32 to vector<16x32xf32>
    %78 = arith.maximumf %76, %77 : vector<16x32xf32>
    %79 = arith.truncf %78 : vector<16x32xf32> to vector<16x32xbf16>
    %c0_54 = arith.constant 0 : index
    %c0_55 = arith.constant 0 : index
    %80 = vector.load %arg12[%c0_54, %c0_55] : memref<32x2xbf16, #tpu.memory_space<vmem>>, vector<32x2xbf16>
    %c0_56 = arith.constant 0 : index
    %c0_57 = arith.constant 0 : index
    %81 = vector.load %arg13[%c0_56, %c0_57] : memref<1x2xf32, #tpu.memory_space<vmem>>, vector<1x2xf32>
    %cst_58 = arith.constant dense<0.000000e+00> : vector<16x2xf32>
    %82 = tpu.matmul %43, %80, %cst_58 {dimension_numbers = #tpu.dot_dimension_numbers<[1], [0], [0], [1], [0, 0, 1, 1], [], []>} : vector<16x32xbf16>, vector<32x2xbf16>, vector<16x2xf32> -> vector<16x2xf32>
    %83 = vector.broadcast %81 : vector<1x2xf32> to vector<16x2xf32>
    %84 = arith.addf %82, %83 : vector<16x2xf32>
    %c0_59 = arith.constant 0 : index
    %c0_60 = arith.constant 0 : index
    %85 = vector.load %arg22[%c0_59, %c0_60] : memref<32x2xbf16, #tpu.memory_space<vmem>>, vector<32x2xbf16>
    %c0_61 = arith.constant 0 : index
    %c0_62 = arith.constant 0 : index
    %86 = vector.load %arg23[%c0_61, %c0_62] : memref<1x2xf32, #tpu.memory_space<vmem>>, vector<1x2xf32>
    %cst_63 = arith.constant dense<0.000000e+00> : vector<16x2xf32>
    %87 = tpu.matmul %79, %85, %cst_63 {dimension_numbers = #tpu.dot_dimension_numbers<[1], [0], [0], [1], [0, 0, 1, 1], [], []>} : vector<16x32xbf16>, vector<32x2xbf16>, vector<16x2xf32> -> vector<16x2xf32>
    %88 = vector.broadcast %86 : vector<1x2xf32> to vector<16x2xf32>
    %89 = arith.addf %87, %88 : vector<16x2xf32>
    %90 = arith.addf %84, %89 : vector<16x2xf32>
    %c0_64 = arith.constant 0 : index
    %c0_65 = arith.constant 0 : index
    %91 = vector.load %arg24[%c0_64, %c0_65] : memref<16x2xf32, #tpu.memory_space<vmem>>, vector<16x2xf32>
    tpu.vector_store %arg24[%c0_64, %c0_65], %90 {strides = array<i32>} : memref<16x2xf32, #tpu.memory_space<vmem>>, vector<16x2xf32>,
    return
  }
  func.func @transform_0(%arg0: i32) -> (i32, i32) {
    %c0_i32 = arith.constant 0 : i32
    %c0_i32_0 = arith.constant 0 : i32
    return %arg0, %c0_i32 : i32, i32
  }
  func.func @transform_1(%arg0: i32) -> (i32, i32) {
    %c0_i32 = arith.constant 0 : i32
    %c0_i32_0 = arith.constant 0 : i32
    %c0_i32_1 = arith.constant 0 : i32
    return %c0_i32, %c0_i32_0 : i32, i32
  }
  func.func @transform_2(%arg0: i32) -> (i32, i32) {
    %c0_i32 = arith.constant 0 : i32
    %c0_i32_0 = arith.constant 0 : i32
    %c0_i32_1 = arith.constant 0 : i32
    return %c0_i32, %c0_i32_0 : i32, i32
  }
  func.func @transform_3(%arg0: i32) -> (i32, i32) {
    %c0_i32 = arith.constant 0 : i32
    %c0_i32_0 = arith.constant 0 : i32
    %c0_i32_1 = arith.constant 0 : i32
    return %c0_i32, %c0_i32_0 : i32, i32
  }
  func.func @transform_4(%arg0: i32) -> (i32, i32) {
    %c0_i32 = arith.constant 0 : i32
    %c0_i32_0 = arith.constant 0 : i32
    %c0_i32_1 = arith.constant 0 : i32
    return %c0_i32, %c0_i32_0 : i32, i32
  }
  func.func @transform_5(%arg0: i32) -> (i32, i32) {
    %c0_i32 = arith.constant 0 : i32
    %c0_i32_0 = arith.constant 0 : i32
    %c0_i32_1 = arith.constant 0 : i32
    return %c0_i32, %c0_i32_0 : i32, i32
  }
  func.func @transform_6(%arg0: i32) -> (i32, i32) {
    %c0_i32 = arith.constant 0 : i32
    %c0_i32_0 = arith.constant 0 : i32
    %c0_i32_1 = arith.constant 0 : i32
    return %c0_i32, %c0_i32_0 : i32, i32
  }
  func.func @transform_7(%arg0: i32) -> (i32, i32) {
    %c0_i32 = arith.constant 0 : i32
    %c0_i32_0 = arith.constant 0 : i32
    %c0_i32_1 = arith.constant 0 : i32
    return %c0_i32, %c0_i32_0 : i32, i32
  }
  func.func @transform_8(%arg0: i32) -> (i32, i32) {
    %c0_i32 = arith.constant 0 : i32
    %c0_i32_0 = arith.constant 0 : i32
    %c0_i32_1 = arith.constant 0 : i32
    return %c0_i32, %c0_i32_0 : i32, i32
  }
  func.func @transform_9(%arg0: i32) -> (i32, i32) {
    %c0_i32 = arith.constant 0 : i32
    %c0_i32_0 = arith.constant 0 : i32
    %c0_i32_1 = arith.constant 0 : i32
    return %c0_i32, %c0_i32_0 : i32, i32
  }
  func.func @transform_10(%arg0: i32) -> (i32, i32) {
    %c0_i32 = arith.constant 0 : i32
    %c0_i32_0 = arith.constant 0 : i32
    %c0_i32_1 = arith.constant 0 : i32
    return %c0_i32, %c0_i32_0 : i32, i32
  }
  func.func @transform_11(%arg0: i32) -> (i32, i32) {
    %c0_i32 = arith.constant 0 : i32
    %c0_i32_0 = arith.constant 0 : i32
    %c0_i32_1 = arith.constant 0 : i32
    return %c0_i32, %c0_i32_0 : i32, i32
  }
  func.func @transform_12(%arg0: i32) -> (i32, i32) {
    %c0_i32 = arith.constant 0 : i32
    %c0_i32_0 = arith.constant 0 : i32
    %c0_i32_1 = arith.constant 0 : i32
    return %c0_i32, %c0_i32_0 : i32, i32
  }
  func.func @transform_13(%arg0: i32) -> (i32, i32) {
    %c0_i32 = arith.constant 0 : i32
    %c0_i32_0 = arith.constant 0 : i32
    %c0_i32_1 = arith.constant 0 : i32
    return %c0_i32, %c0_i32_0 : i32, i32
  }
  func.func @transform_14(%arg0: i32) -> (i32, i32) {
    %c0_i32 = arith.constant 0 : i32
    %c0_i32_0 = arith.constant 0 : i32
    %c0_i32_1 = arith.constant 0 : i32
    return %c0_i32, %c0_i32_0 : i32, i32
  }
  func.func @transform_15(%arg0: i32) -> (i32, i32) {
    %c0_i32 = arith.constant 0 : i32
    %c0_i32_0 = arith.constant 0 : i32
    %c0_i32_1 = arith.constant 0 : i32
    return %c0_i32, %c0_i32_0 : i32, i32
  }
  func.func @transform_16(%arg0: i32) -> (i32, i32) {
    %c0_i32 = arith.constant 0 : i32
    %c0_i32_0 = arith.constant 0 : i32
    %c0_i32_1 = arith.constant 0 : i32
    return %c0_i32, %c0_i32_0 : i32, i32
  }
  func.func @transform_17(%arg0: i32) -> (i32, i32) {
    %c0_i32 = arith.constant 0 : i32
    %c0_i32_0 = arith.constant 0 : i32
    %c0_i32_1 = arith.constant 0 : i32
    return %c0_i32, %c0_i32_0 : i32, i32
  }
  func.func @transform_18(%arg0: i32) -> (i32, i32) {
    %c0_i32 = arith.constant 0 : i32
    %c0_i32_0 = arith.constant 0 : i32
    %c0_i32_1 = arith.constant 0 : i32
    return %c0_i32, %c0_i32_0 : i32, i32
  }
  func.func @transform_19(%arg0: i32) -> (i32, i32) {
    %c0_i32 = arith.constant 0 : i32
    %c0_i32_0 = arith.constant 0 : i32
    %c0_i32_1 = arith.constant 0 : i32
    return %c0_i32, %c0_i32_0 : i32, i32
  }
  func.func @transform_20(%arg0: i32) -> (i32, i32) {
    %c0_i32 = arith.constant 0 : i32
    %c0_i32_0 = arith.constant 0 : i32
    %c0_i32_1 = arith.constant 0 : i32
    return %c0_i32, %c0_i32_0 : i32, i32
  }
  func.func @transform_21(%arg0: i32) -> (i32, i32) {
    %c0_i32 = arith.constant 0 : i32
    %c0_i32_0 = arith.constant 0 : i32
    %c0_i32_1 = arith.constant 0 : i32
    return %c0_i32, %c0_i32_0 : i32, i32
  }
  func.func @transform_22(%arg0: i32) -> (i32, i32) {
    %c0_i32 = arith.constant 0 : i32
    %c0_i32_0 = arith.constant 0 : i32
    %c0_i32_1 = arith.constant 0 : i32
    return %c0_i32, %c0_i32_0 : i32, i32
  }
  func.func @transform_23(%arg0: i32) -> (i32, i32) {
    %c0_i32 = arith.constant 0 : i32
    %c0_i32_0 = arith.constant 0 : i32
    return %arg0, %c0_i32 : i32, i32
  }
}

</mosaic_0001>

<bundles_post_ra>
// kernel: tpu_custom_call.1
= control target key start
LH: loop header
LB: loop body
LE: loop exit
PB: predicated region body
PF: predicated region fallthrough
CT: control target
= control target key end

     0   :  { %s6041_s0 = inlined_call_operand.vmem [shape: f32[20,600], index: 0, kind: input, shape index: {}]   ;;  %s6042_s1 = inlined_call_operand.hbm [shape: bf16[600,512], index: 1, kind: input, shape index: {}]   ;;  %s6043_s2 = inlined_call_operand.hbm [shape: f32[1,512], index: 2, kind: input, shape index: {}]   ;;  %s6044_s3 = inlined_call_operand.hbm [shape: bf16[512,256], index: 3, kind: input, shape index: {}]   ;;  %s6045_s4 = inlined_call_operand.vmem [shape: f32[1,256], index: 4, kind: input, shape index: {}]   ;;  %s6046_s5 = inlined_call_operand.vmem [shape: bf16[256,128], index: 5, kind: input, shape index: {}]   ;;  %s6047_s6 = inlined_call_operand.vmem [shape: f32[1,128], index: 6, kind: input, shape index: {}]   ;;  %s6048_s7 = inlined_call_operand.hbm [shape: bf16[128,128], index: 7, kind: input, shape index: {}]   ;;  %s6049_s8 = inlined_call_operand.hbm [shape: f32[1,128], index: 8, kind: input, shape index: {}]   ;;  %s6050_s9 = inlined_call_operand.vmem [shape: bf16[128,32], index: 9, kind: input, shape index: {}]   ;;  %s6051_s10 = inlined_call_operand.hbm [shape: f32[1,32], index: 10, kind: input, shape index: {}]   ;;  %s6052_s11 = inlined_call_operand.vmem [shape: bf16[32,2], index: 11, kind: input, shape index: {}]   ;;  %s6053_s12 = inlined_call_operand.hbm [shape: f32[1,2], index: 12, kind: input, shape index: {}]   ;;  %s6054_s13 = inlined_call_operand.hbm [shape: bf16[128,128], index: 13, kind: input, shape index: {}]   ;;  %s6055_s14 = inlined_call_operand.hbm [shape: f32[1,128], index: 14, kind: input, shape index: {}]   ;;  %s6056_s15 = inlined_call_operand.hbm [shape: bf16[128,128], index: 15, kind: input, shape index: {}]   ;;  %s6057_s16 = inlined_call_operand.vmem [shape: f32[1,128], index: 16, kind: input, shape index: {}]   ;;  %s6058_s17 = inlined_call_operand.vmem [shape: bf16[128,64], index: 17, kind: input, shape index: {}]   ;;  %s6059_s18 = inlined_call_operand.vmem [shape: f32[1,64], index: 18, kind: input, shape index: {}]   ;;  %s6060_s19 = inlined_call_operand.vmem [shape: bf16[64,32], index: 19, kind: input, shape index: {}]   ;;  %s6061_s20 = inlined_call_operand.vmem [shape: f32[1,32], index: 20, kind: input, shape index: {}]   ;;  %s6062_s21 = inlined_call_operand.vmem [shape: bf16[32,2], index: 21, kind: input, shape index: {}]   ;;  %s6063_s22 = inlined_call_operand.vmem [shape: f32[1,2], index: 22, kind: input, shape index: {}]   ;;  %s6064_s23 = inlined_call_operand.vmem [shape: f32[20,2], index: 23, kind: output, shape index: {}]  }
   0x1   :  { %6075 = sst [smem:[#allocation29_spill]] %s6041_s0 }
   0x2   :  { %6076 = sst [smem:[#allocation30_spill]] %s6042_s1 }
   0x3   :  { %6077 = sst [smem:[#allocation31_spill]] %s6043_s2 }
   0x4   :  { %6078 = sst [smem:[#allocation32_spill]] %s6044_s3 }
   0x5   :  { %6079 = sst [smem:[#allocation33_spill]] %s6045_s4 }
   0x6   :  { %6080 = sst [smem:[#allocation34_spill]] %s6046_s5 }
   0x7   :  { %6081 = sst [smem:[#allocation35_spill]] %s6047_s6 }
   0x8   :  { %6082 = sst [smem:[#allocation36_spill]] %s6048_s7 }
   0x9   :  { %6083 = sst [smem:[#allocation37_spill]] %s6051_s10 }
   0xa   :  { %6084 = sst [smem:[#allocation38_spill]] %s6054_s13 }
   0xb   :  { %6085 = sst [smem:[#allocation39_spill]] %s6064_s23 }
   0xc   :  { %28 = vsyncpa [#allocation3], 0 }
   0xd   :  { %29 = vsyncpa [#allocation5], 0 }
   0xe   :  { %30 = vsyncpa [#allocation8], 0 }
   0xf   :  { %31 = vsyncpa [#allocation11], 0 }
  0x10   :  { %32 = vsyncpa [#allocation14], 0 }
  0x11   :  { %33 = vsyncpa [#allocation17], 0  ;;  %s5562_s4 = smov 0   ;;  %s5564_s30 = smov 0  }
  0x12   :  { %s5566_s24 = smov 0  }
  0x13 LB: > { %6086 = sst [smem:[#allocation25_spill]] %s5385_s30  ;;  %s5575_s25 = sadd.s32 4294967295, %s5389_s24   ;;  %s5389_s24 = sphi %s5566_s24, %s6122_s24   ;;  %s5385_s30 = sphi %s5564_s30, %s6124_s30   ;;  %s5381_s4 = sphi %s5562_s4, %s6123_s4  }
  0x14   : > { %s5577_s5 = sadd.s32 1, %s5389_s24   ;;  %s534_s26 = sadd.s32 1, %s5385_s30 }
  0x15   : > { %6087 = sst [smem:[#allocation26_spill]] %s5577_s5  ;;  %s531_s1 = ssub.s32 %s5389_s24, %s5577_s5 }
  0x16   : > { %p532_p0 = scmp.eq.s32.totalorder %s531_s1, 0  ;;  %p544_p1 = scmp.ne.s32.totalorder %s5385_s30, %s5381_s4 }
  0x17   : > { %p545_p2 = scmp.eq.s32.totalorder %s5575_s25, 1  ;;  %p3904_p3 = scmp.ge.s32.totalorder %s5389_s24, 1 }
  0x18   : > { %s5585_s2 = scalar_select %p532_p0, %s5385_s30, %s534_s26  }
  0x19   : > { %p5587_p4 = por %p545_p2, %p544_p1  ;;  %p558_p5 = scmp.lt.s32.totalorder %s5389_s24, 3 }
  0x1a   : > { %6088 = sst [smem:[#allocation27_spill]] %s5585_s2  ;;  %p6067_p6 = scmp.eq.s32.totalorder %s5575_s25, 0 }
  0x1b   : > { %s6089_s6 = scalar_select %p5587_p4, 1, 0 }
  0x1c   : > { %p5592_p7 = pnand %p3904_p3, %p558_p5  ;;  %s5423_s7 = smov [#allocation4]  }
  0x1d   : > { %6090 = sst [smem:[#allocation28_spill]] %s6089_s6  ;;  %s584_s28 = sshll.u32 %s5423_s7, 4  ;;  %s585_s28 = int_to_ptr.vmem [resolvable:$true] %s584_s28 }
  0x1e   : > { %s6091_s27 = scalar_select %p5592_p7, 1, 0 }
  0x1f   : > { %p4495_p8 = pneg %p5592_p7  ;;  %s5424_s29 = smov [#allocation7]  }
  0x20   : > { %s616_s3 = sshll.u32 %s5424_s29, 4  ;;  %s5425_s24 = smov [#allocation10]   ;;  %s617_s3 = int_to_ptr.vmem [resolvable:$true] %s616_s3 }
  0x21   : > { %p5600_p9 = pnand %p6067_p6, %p4495_p8  ;;  %s644_s1 = sshll.u32 %s5425_s24, 4  ;;  %s645_s1 = int_to_ptr.vmem [resolvable:$true] %s644_s1 }
  0x22   : > { %s5062_s7 = scalar_lea.vmem %s585_s28, 64  ;;  %p5070_p0 = scmp.lt.s32.totalorder %s585_s28, %s585_s28 }
  0x23   : > { %p5606_p10 = pneg %p5600_p9  ;;  %p5063_p11 = scmp.ne.s32.totalorder %s585_s28, %s5062_s7 }
  0x24   : > { %p5071_p1 = scmp.lt.s32.totalorder %s5062_s7, %s5062_s7 }
  0x25   : > { %p5065_p12 = pnand %p5063_p11, %p5606_p10 }
  0x26   : > { %p5072_p2 = por %p5071_p1, %p5070_p0 }
  0x27   : > { %p5066_p13 = pneg %p5065_p12 }
  0x29   : > { %p5073_p3 = pnand %p5072_p2, %p5066_p13 }
  0x2b   : > { %5076 = shalt.err (!%p5073_p3)
}
  0x2c   : > { %s6094_s2 = sld [smem:[#allocation31_spill]]  ;;  %s5088_s30 = scalar_lea.vmem %s617_s3, 1024 }
  0x2d   : > { %p5089_p5 = scmp.ne.s32.totalorder %s617_s3, %s5088_s30  ;;  %p5096_p4 = scmp.lt.s32.totalorder %s617_s3, %s617_s3 }
  0x2e   : > { %p5097_p11 = scmp.lt.s32.totalorder %s5088_s30, %s5088_s30 }
  0x2f   : > { %p5091_p8 = pnand %p5089_p5, %p5606_p10 }
  0x30   : > { %p5098_p12 = por %p5097_p11, %p5096_p4 }
  0x31   : > { %p5092_p6 = pneg %p5091_p8 }
  0x32   : > { %4501 = dma.hbm_to_vmem [thread:$0]  (!%p5600_p9), %s6094_s2, 64, %s585_s28, [#allocation5]  }
  0x33   : > { %p5099_p7 = pnand %p5098_p12, %p5092_p6 }
  0x35   : > { %5102 = shalt.err (!%p5099_p7)
}
  0x36   : > { %s6072_s7 = smov 64   ;;  %s6074_s5 = smov 4  }
  0x37   : > { %s6095_s28 = sld [smem:[#allocation36_spill]]  ;;  %s5114_s24 = scalar_lea.vmem %s645_s1, 16 }
  0x38   : > { %p5115_p13 = scmp.ne.s32.totalorder %s645_s1, %s5114_s24  ;;  %s5121_s30 = scalar_lea.vmem %s645_s1, 32 }
  0x39   : > { %p5122_p6 = scmp.lt.s32.totalorder %s645_s1, %s645_s1  ;;  %p5123_p7 = scmp.lt.s32.totalorder %s5121_s30, %s5114_s24 }
  0x3a   : > { %p5117_p0 = pnand %p5115_p13, %p5606_p10 }
  0x3b   : > { %p5124_p1 = por %p5123_p7, %p5122_p6 }
  0x3c   : > { %p5118_p4 = pneg %p5117_p0 }
  0x3d   : > { %4507 = dma.hbm_to_vmem [thread:$0]  (!%p5600_p9), %s6095_s28, 1024, %s617_s3, [#allocation8], %s6072_s7, %s6072_s7, %s6074_s5  }
  0x3e   : > { %p5125_p2 = pnand %p5124_p1, %p5118_p4 }
  0x40   : > { %5128 = shalt.err (!%p5125_p2)
}
  0x41   : > { %s6096_s10 = sld [smem:[#allocation37_spill]]  ;;  %s5428_s3 = smov [#allocation13]  }
  0x42   : > { %s668_s29 = sshll.u32 %s5428_s3, 4  ;;  %s5429_s2 = smov [#allocation2]   ;;  %s669_s29 = int_to_ptr.vmem [resolvable:$true] %s668_s29 }
  0x43   : > { %s570_s28 = sshll.u32 %s5429_s2, 4  ;;  %s5140_s7 = scalar_lea.vmem %s669_s29, 1024  ;;  %s571_s28 = int_to_ptr.vmem [resolvable:$true] %s570_s28 }
  0x44   : > { %p5141_p3 = scmp.ne.s32.totalorder %s669_s29, %s5140_s7  ;;  %p5148_p11 = scmp.lt.s32.totalorder %s669_s29, %s669_s29 }
  0x45   : > { %p5149_p12 = scmp.lt.s32.totalorder %s5140_s7, %s5140_s7 }
  0x46   : > { %p5143_p5 = pnand %p5141_p3, %p5606_p10 }
  0x47   : > { %4513 = dma.hbm_to_vmem [thread:$0]  (!%p5600_p9), %s6096_s10, 16, %s645_s1, [#allocation11]  }
  0x48   : > { %p5144_p8 = pneg %p5143_p5  ;;  %p5150_p13 = por %p5149_p12, %p5148_p11 }
  0x4a   : > { %p5151_p0 = pnand %p5150_p13, %p5144_p8 }
  0x4c   : > { %5154 = shalt.err (!%p5151_p0)
}
  0x4d   : > { %s6097_s23 = smov 64   ;;  %s6098_s13 = sld [smem:[#allocation38_spill]] }
  0x4e   : > { %s5166_s24 = scalar_lea.vmem %s571_s28, 19200  ;;  %p5174_p1 = scmp.lt.s32.totalorder %s571_s28, %s571_s28 }
  0x4f   : > { %p5167_p4 = scmp.ne.s32.totalorder %s571_s28, %s5166_s24  ;;  %p5175_p2 = scmp.lt.s32.totalorder %s5166_s24, %s5166_s24 }
  0x51   : > { %p5169_p6 = pnand %p5167_p4, %p5606_p10  ;;  %p5176_p3 = por %p5175_p2, %p5174_p1 }
  0x53   : > { %4519 = dma.hbm_to_vmem [thread:$0]  (!%p5600_p9), %s6098_s13, 1024, %s669_s29, [#allocation14], %s6097_s23, %s6097_s23, %s6074_s5  }
  0x54   : > { %p5170_p7 = pneg %p5169_p6 }
  0x56   : > { %p5177_p5 = pnand %p5176_p3, %p5170_p7 }
  0x58   : > { %5180 = shalt.err (!%p5177_p5)
}
  0x59   : > { %s5430_s7 = smov 256   ;;  %s5431_s30 = smov 16  }
  0x5a   : > { %s6099_s6 = sld [smem:[#allocation30_spill]]  ;;  %s5432_s29 = smov [#allocation6]  }
  0x5b   : > { %s594_s1 = sshll.u32 %s5432_s29, 4  ;;  %s595_s1 = int_to_ptr.vmem [resolvable:$true] %s594_s1 }
  0x5c   : > { %s5192_s5 = scalar_lea.vmem %s595_s1, 8192  ;;  %p5200_p13 = scmp.lt.s32.totalorder %s595_s1, %s595_s1 }
  0x5d   : > { %p5193_p8 = scmp.ne.s32.totalorder %s595_s1, %s5192_s5  ;;  %p5201_p0 = scmp.lt.s32.totalorder %s5192_s5, %s5192_s5 }
  0x5f   : > { %p5195_p11 = pnand %p5193_p8, %p5606_p10  ;;  %p5202_p4 = por %p5201_p0, %p5200_p13 }
  0x60   : > { %4498 = dma.hbm_to_vmem [thread:$0]  (!%p5600_p9), %s6099_s6, 19200, %s571_s28, [#allocation3], %s5430_s7, %s5430_s7, %s5431_s30  }
  0x61   : > { %p5196_p12 = pneg %p5195_p11 }
  0x63   : > { %p5203_p6 = pnand %p5202_p4, %p5196_p12 }
  0x65   : > { %5206 = shalt.err (!%p5203_p6)
}
  0x66   : > { %s5433_s24 = smov 128   ;;  %s5434_s10 = smov 8  }
  0x67   : > { %s6100_s7 = sld [smem:[#allocation32_spill]]  ;;  %s5435_s30 = smov [#allocation9]  }
  0x68   : > { %s630_s2 = sshll.u32 %s5435_s30, 4  ;;  %s5436_s6 = smov [#allocation12]   ;;  %s631_s2 = int_to_ptr.vmem [resolvable:$true] %s630_s2 }
  0x69   : > { %s658_s29 = sshll.u32 %s5436_s6, 4  ;;  %s5218_s13 = scalar_lea.vmem %s631_s2, 16  ;;  %s659_s29 = int_to_ptr.vmem [resolvable:$true] %s658_s29 }
  0x6a   : > { %p5219_p7 = scmp.ne.s32.totalorder %s631_s2, %s5218_s13  ;;  %s5225_s5 = scalar_lea.vmem %s631_s2, 32 }
  0x6b   : > { %p5226_p3 = scmp.lt.s32.totalorder %s631_s2, %s631_s2  ;;  %p5227_p5 = scmp.lt.s32.totalorder %s5225_s5, %s5218_s13 }
  0x6c   : > { %p5221_p1 = pnand %p5219_p7, %p5606_p10 }
  0x6d   : > { %4504 = dma.hbm_to_vmem [thread:$0]  (!%p5600_p9), %s6100_s7, 8192, %s595_s1, [#allocation5], %s5433_s24, %s5433_s24, %s5434_s10  }
  0x6e   : > { %p5222_p2 = pneg %p5221_p1  ;;  %p5228_p8 = por %p5227_p5, %p5226_p3 }
  0x70   : > { %p5229_p11 = pnand %p5228_p8, %p5222_p2 }
  0x72   : > { %5232 = shalt.err (!%p5229_p11)
}
  0x73   : > { %4510 = dma.hbm_to_vmem [thread:$0]  (!%p5600_p9), %s6049_s8, 16, %s631_s2, [#allocation8]  }
  0x74   : > { %s5244_s24 = scalar_lea.vmem %s659_s29, 16  ;;  %s5251_s3 = scalar_lea.vmem %s659_s29, 32 }
  0x75   : > { %p5245_p12 = scmp.ne.s32.totalorder %s659_s29, %s5244_s24  ;;  %p5252_p4 = scmp.lt.s32.totalorder %s659_s29, %s659_s29 }
  0x76   : > { %p5253_p6 = scmp.lt.s32.totalorder %s5251_s3, %s5244_s24 }
  0x77   : > { %p5247_p13 = pnand %p5245_p12, %p5606_p10 }
  0x78   : > { %p5254_p7 = por %p5253_p6, %p5252_p4 }
  0x79   : > { %p5248_p0 = pneg %p5247_p13 }
  0x7b   : > { %p5255_p1 = pnand %p5254_p7, %p5248_p0 }
  0x7d   : > { %5258 = shalt.err (!%p5255_p1)
}
  0x7e   : > { %4516 = dma.hbm_to_vmem [thread:$0]  (!%p5600_p9), %s6053_s12, 16, %s659_s29, [#allocation11]  }
  0x7f   : > { %s5437_s7 = smov [#allocation15]   ;;  %s5438_s2 = smov [#allocation16]  }
  0x80   : > { %s682_s30 = sshll.u32 %s5437_s7, 4  ;;  %s692_s6 = sshll.u32 %s5438_s2, 4  ;;  %s683_s30 = int_to_ptr.vmem [resolvable:$true] %s682_s30  ;;  %s693_s6 = int_to_ptr.vmem [resolvable:$true] %s692_s6 }
  0x81   : > { %s5270_s5 = scalar_lea.vmem %s683_s30, 16  ;;  %s5277_s10 = scalar_lea.vmem %s683_s30, 32 }
  0x82   : > { %p5271_p2 = scmp.ne.s32.totalorder %s683_s30, %s5270_s5  ;;  %p5278_p8 = scmp.lt.s32.totalorder %s683_s30, %s683_s30 }
  0x83   : > { %p5279_p11 = scmp.lt.s32.totalorder %s5277_s10, %s5270_s5 }
  0x84   : > { %p5273_p3 = pnand %p5271_p2, %p5606_p10 }
  0x85   : > { %p5280_p12 = por %p5279_p11, %p5278_p8 }
  0x86   : > { %p5274_p5 = pneg %p5273_p3 }
  0x88   : > { %p5281_p13 = pnand %p5280_p12, %p5274_p5 }
  0x8a   : > { %5284 = shalt.err (!%p5281_p13)
}
  0x8b   : > { %4522 = dma.hbm_to_vmem [thread:$0]  (!%p5600_p9), %s6055_s14, 16, %s683_s30, [#allocation14]  }
  0x8c   : > { %s5296_s24 = scalar_lea.vmem %s693_s6, 1024  ;;  %p5304_p7 = scmp.lt.s32.totalorder %s693_s6, %s693_s6 }
  0x8d   : > { %p5297_p0 = scmp.ne.s32.totalorder %s693_s6, %s5296_s24  ;;  %p5305_p1 = scmp.lt.s32.totalorder %s5296_s24, %s5296_s24 }
  0x8f   : > { %p5299_p4 = pnand %p5297_p0, %p5606_p10  ;;  %p5306_p2 = por %p5305_p1, %p5304_p7 }
  0x91   : > { %p5300_p6 = pneg %p5299_p4 }
  0x93   : > { %p5307_p3 = pnand %p5306_p2, %p5300_p6 }
  0x95   : > { %5310 = shalt.err (!%p5307_p3)
}
  0x96   : > { %s6101_s3 = smov 4   ;;  %p6102_p5 = scmp.ne.s32.totalorder %s6091_s27, 0 }
  0x97   : > { %4525 = dma.hbm_to_vmem [thread:$0]  (!%p5600_p9), %s6056_s15, 1024, %s693_s6, [#allocation17], %s6097_s23, %s6097_s23, %s6101_s3  }
  0x98   : > { %749 = sbr.rel (%p6102_p5) target bundleno = 2248 (0x8c8), region = 112  ;;  %p6103_p10 = scmp.eq.s32.totalorder (!%p6102_p5), %s5575_s25, 0 }
  0x9d   : > { %5356 = dma.done.wait (%p6103_p10), [#allocation3], 19200   ;;  %p6104_p8 = pmov %p6103_p10 }
  0x9f   : > { %5358 = vsyncadd (%p6104_p8), [#allocation3], 4294948096  ;;  %p6105_p11 = pmov %p6104_p8 }
  0xa0   : > { %p6106_p12 = pmov %p6104_p8 }
  0xa1   : > { %5360 = dma.done.wait (%p6105_p11), [#allocation5], 8256  }
  0xa2   : > { %5362 = vsyncadd (%p6106_p12), [#allocation5], 4294959040  ;;  %p6107_p13 = pmov %p6104_p8 }
  0xa3   : > { %p6108_p9 = pmov %p6104_p8 }
  0xa4   : > { %5364 = dma.done.wait (%p6107_p13), [#allocation8], 1040  }
  0xa5   : > { %5366 = vsyncadd (%p6108_p9), [#allocation8], 4294966256  ;;  %p6109_p0 = pmov %p6104_p8 }
  0xa7   : > { %5368 = dma.done.wait (%p6109_p0), [#allocation11], 32   ;;  %p6110_p4 = pmov %p6109_p0 }
  0xa8   : > { %p6111_p6 = pmov %p6109_p0 }
  0xa9   : > { %5370 = vsyncadd (%p6110_p4), [#allocation11], 4294967264 }
  0xaa   : > { %5372 = dma.done.wait (%p6111_p6), [#allocation14], 1040   ;;  %p6112_p7 = pmov %p6109_p0 }
  0xab   : > { %p6113_p1 = pmov %p6109_p0 }
  0xac   : > { %5374 = vsyncadd (%p6112_p7), [#allocation14], 4294966256 }
  0xad   : > { %5376 = dma.done.wait (%p6113_p1), [#allocation17], 1024   ;;  %p6114_p2 = pmov %p6109_p0 }
  0xae   : > { %v4653_v0 = vld [vmem:[#allocation2 + $0xe4] ss:$16 sps:$4 sm:$0xff]   ;;  %v4657_v2 = vld [vmem:[#allocation2 + $0xe0] ss:$16 sps:$4 sm:$0xff]   ;;  %s5716_s27 = sshll.u32 %s5575_s25, 1  ;;  %s6115_s30 = sld [smem:[#allocation29_spill]] }
  0xaf   : > { %5378 = vsyncadd (%p6114_p2), [#allocation17], 4294966272  ;;  %v4655_v1 = vld [vmem:[#allocation2 + $0x2e4] ss:$16 sps:$4 sm:$0xff]   ;;  %1831 = vmatprep.subr.bf16.mxu0 %v4653_v0  ;;  %v4658_v3 = vld [vmem:[#allocation2 + $0x2e0] ss:$16 sps:$4 sm:$0xff]  }
  0xb0   : > { %1874 = vmatprep.subr.bf16.mxu1 %v4655_v1  ;;  %v4659_v4 = vld [vmem:[#allocation2 + $0xc4] ss:$16 sps:$4 sm:$0xff]   ;;  %1832 = vmatpush1.bf16.msra.mxu0 %v4657_v2  ;;  %v4663_v6 = vld [vmem:[#allocation2 + $0xc0] ss:$16 sps:$4 sm:$0xff]   ;;  %p860_p3 = scmp.lt.s32.totalorder %s5716_s27, 2  ;;  %vm1818_vm0 = vcmask 1043456  }
  0xb1   : > { %1875 = vmatpush1.bf16.msra.mxu1 %v4658_v3  ;;  %v4661_v5 = vld [vmem:[#allocation2 + $0x2c4] ss:$16 sps:$4 sm:$0xff]   ;;  %1833 = vmatprep.subr.bf16.mxu0 %v4659_v4  ;;  %v4664_v7 = vld [vmem:[#allocation2 + $0x2c0] ss:$16 sps:$4 sm:$0xff]   ;;  %vm1814_vm1 = vcmask 719872   ;;  %s6116_s10 = sld [smem:[#allocation34_spill]] }
  0xb2   : > { %1876 = vmatprep.subr.bf16.mxu1 %v4661_v5  ;;  %v4665_v8 = vld [vmem:[#allocation2 + $0xa4] ss:$16 sps:$4 sm:$0xff]   ;;  %v4669_v10 = vld [vmem:[#allocation2 + $0xa0] ss:$16 sps:$4 sm:$0xff]   ;;  %s861_s0 = scalar_select %p860_p3, %s5716_s27, 2  ;;  %vm5441_vm2 = vmmov 0  }
  0xb3   : > { %v4667_v9 = vld [vmem:[#allocation2 + $0x2a4] ss:$16 sps:$4 sm:$0xff]   ;;  %v4670_v11 = vld [vmem:[#allocation2 + $0x2a0] ss:$16 sps:$4 sm:$0xff]   ;;  %s6117_s13 = sld [smem:[#allocation33_spill]]  ;;  %vm3468_vm3 = vcmask 261120  }
  0xb4   : > { %1834 = vmatpush1.bf16.msra.mxu0 %v4663_v6  ;;  %v4671_v12 = vld [vmem:[#allocation2 + $0x84] ss:$16 sps:$4 sm:$0xff]   ;;  %v4675_v14 = vld [vmem:[#allocation2 + $0x80] ss:$16 sps:$4 sm:$0xff]   ;;  %s4454_s26 = smul.u32 40, %s861_s0  ;;  %s6118_s3 = sld [smem:[#allocation35_spill]] }
  0xb5   : > { %1877 = vmatpush1.bf16.msra.mxu1 %v4664_v7  ;;  %1835 = vmatprep.subr.bf16.mxu0 %v4665_v8  ;;  %v4673_v13 = vld [vmem:[#allocation2 + $0x284] ss:$16 sps:$4 sm:$0xff]   ;;  %v4676_v15 = vld [vmem:[#allocation2 + $0x280] ss:$16 sps:$4 sm:$0xff]   ;;  %vm3397_vm4 = vcmask 523264   ;;  %s851_s0 = sand.u32 1, %s5381_s4  }
  0xb6   : > { %1878 = vmatprep.subr.bf16.mxu1 %v4667_v9  ;;  %v4677_v16 = vld [vmem:[#allocation2 + $0x64] ss:$16 sps:$4 sm:$0xff]   ;;  %v4681_v18 = vld [vmem:[#allocation2 + $0x60] ss:$16 sps:$4 sm:$0xff]   ;;  %s5723_s2 = scalar_lea.vmem %s6115_s30, %s4454_s26  ;;  %s3927_s7 = sshll.u32 %s851_s0, 4  ;;  %vm3582_vm5 = vcmask 15360  }
  0xb7   : > { %v4679_v17 = vld [vmem:[#allocation2 + $0x264] ss:$16 sps:$4 sm:$0xff]   ;;  %v4682_v19 = vld [vmem:[#allocation2 + $0x260] ss:$16 sps:$4 sm:$0xff]   ;;  %v878_v46 = vld [vmem:[%s5723_s2 + $0x8] sm:$0xff]  ;;  %s5996_s30 = scalar_lea.vmem [#allocation18], %s3927_s7  }
  0xb8   : > { %1836 = vmatpush1.bf16.msra.mxu0 %v4669_v10  ;;  %v4683_v20 = vld [vmem:[#allocation2 + $0x44] ss:$16 sps:$4 sm:$0xff]   ;;  %v4687_v22 = vld [vmem:[#allocation2 + $0x40] ss:$16 sps:$4 sm:$0xff]   ;;  %v880_v48 = vld [vmem:[%s5723_s2 + $0x18] sm:$0xff]  ;;  %s6119_s4 = sld [smem:[#allocation28_spill]] }
  0xb9   : > { %1879 = vmatpush1.bf16.msra.mxu1 %v4670_v11  ;;  %1837 = vmatprep.subr.bf16.mxu0 %v4671_v12  ;;  %v4685_v21 = vld [vmem:[#allocation2 + $0x244] ss:$16 sps:$4 sm:$0xff]   ;;  %v4688_v23 = vld [vmem:[#allocation2 + $0x240] ss:$16 sps:$4 sm:$0xff]   ;;  %v882_v8 = vld [vmem:[%s5723_s2 + $0x28] sm:$0xff] }
  0xba   : > { %1880 = vmatprep.subr.bf16.mxu1 %v4673_v13  ;;  %v4689_v24 = vld [vmem:[#allocation2 + $0x24] ss:$16 sps:$4 sm:$0xff]   ;;  %v4693_v26 = vld [vmem:[#allocation2 + $0x20] ss:$16 sps:$4 sm:$0xff]   ;;  %v884_v10 = vld [vmem:[%s5723_s2 + $0x38] sm:$0xff] }
  0xbb   : > { %v4691_v25 = vld [vmem:[#allocation2 + $0x224] ss:$16 sps:$4 sm:$0xff]   ;;  %v4694_v27 = vld [vmem:[#allocation2 + $0x220] ss:$16 sps:$4 sm:$0xff]   ;;  %v4752_v12 = vld [vmem:[#allocation2 + $0xec] ss:$16 sps:$4 sm:$0xff]  }
  0xbc   : > { %1838 = vmatpush1.bf16.msra.mxu0 %v4675_v14  ;;  %v4695_v28 = vld [vmem:[#allocation2 + $0x4] ss:$16 sps:$4 sm:$0xff]   ;;  %v4699_v30 = vld [vmem:[#allocation2] ss:$16 sps:$4 sm:$0xff]  }
  0xbd   : > { %1881 = vmatpush1.bf16.msra.mxu1 %v4676_v15  ;;  %1839 = vmatprep.subr.bf16.mxu0 %v4677_v16  ;;  %v4697_v29 = vld [vmem:[#allocation2 + $0x204] ss:$16 sps:$4 sm:$0xff]   ;;  %v4700_v31 = vld [vmem:[#allocation2 + $0x200] ss:$16 sps:$4 sm:$0xff]   ;;  %v4750_v16 = vld [vmem:[#allocation2 + $0xe8] ss:$16 sps:$4 sm:$0xff]  }
  0xbe   : > { %1882 = vmatprep.subr.bf16.mxu1 %v4679_v17  ;;  %v4701_v32 = vld [vmem:[#allocation2 + $0x1e4] ss:$16 sps:$4 sm:$0xff]   ;;  %v4705_v34 = vld [vmem:[#allocation2 + $0x1e0] ss:$16 sps:$4 sm:$0xff]   ;;  %p6120_p5 = scmp.ne.s32.totalorder %s6119_s4, 0 }
  0xbf   : > { %v4703_v33 = vld [vmem:[#allocation2 + $0x3e4] ss:$16 sps:$4 sm:$0xff]   ;;  %v4706_v35 = vld [vmem:[#allocation2 + $0x3e0] ss:$16 sps:$4 sm:$0xff]   ;;  %s4245_s6 = sshll.u32 (%p6120_p5), %s5575_s25, 4  ;;  %s6121_s1 = sld [smem:[#allocation39_spill]] (%p6120_p5) }
  0xc0   : > { %1840 = vmatpush1.bf16.msra.mxu0 %v4681_v18  ;;  %v4707_v36 = vld [vmem:[#allocation2 + $0x1c4] ss:$16 sps:$4 sm:$0xff]   ;;  %v4711_v38 = vld [vmem:[#allocation2 + $0x1c0] ss:$16 sps:$4 sm:$0xff]  }
  0xc1   : > { %1883 = vmatpush1.bf16.msra.mxu1 %v4682_v19  ;;  %1841 = vmatprep.subr.bf16.mxu0 %v4683_v20  ;;  %v4709_v37 = vld [vmem:[#allocation2 + $0x3c4] ss:$16 sps:$4 sm:$0xff]   ;;  %v4712_v39 = vld [vmem:[#allocation2 + $0x3c0] ss:$16 sps:$4 sm:$0xff]   ;;  %v4759_v19 = vld [vmem:[#allocation2 + $0xcc] ss:$16 sps:$4 sm:$0xff]  }
  0xc2   : > { %1884 = vmatprep.subr.bf16.mxu1 %v4685_v21  ;;  %v4713_v40 = vld [vmem:[#allocation2 + $0x1a4] ss:$16 sps:$4 sm:$0xff]   ;;  %v4717_v42 = vld [vmem:[#allocation2 + $0x1a0] ss:$16 sps:$4 sm:$0xff]   ;;  %v4757_v21 = vld [vmem:[#allocation2 + $0xc8] ss:$16 sps:$4 sm:$0xff]  }
  0xc3   : > { %v4715_v41 = vld [vmem:[#allocation2 + $0x3a4] ss:$16 sps:$4 sm:$0xff]   ;;  %v4718_v43 = vld [vmem:[#allocation2 + $0x3a0] ss:$16 sps:$4 sm:$0xff]  }
  0xc4   : > { %1842 = vmatpush1.bf16.msra.mxu0 %v4687_v22  ;;  %v4719_v44 = vld [vmem:[#allocation2 + $0x184] ss:$16 sps:$4 sm:$0xff]   ;;  %v4723_v50 = vld [vmem:[#allocation2 + $0x180] ss:$16 sps:$4 sm:$0xff]  }
  0xc5   : > { %1885 = vmatpush1.bf16.msra.mxu1 %v4688_v23  ;;  %1843 = vmatprep.subr.bf16.mxu0 %v4689_v24  ;;  %v4721_v45 = vld [vmem:[#allocation2 + $0x384] ss:$16 sps:$4 sm:$0xff]   ;;  %v4724_v51 = vld [vmem:[#allocation2 + $0x380] ss:$16 sps:$4 sm:$0xff]   ;;  %v4765_v23 = vld [vmem:[#allocation2 + $0xac] ss:$16 sps:$4 sm:$0xff]   ;;  %s6007_s24 = scalar_lea.vmem (%p6120_p5), %s6121_s1, %s4245_s6  }
  0xc6   : > { %1886 = vmatprep.subr.bf16.mxu1 %v4691_v25  ;;  %v883_v47 = vld [vmem:[%s5723_s2 + $0x30] sm:$0xff]  ;;  %v885_v49 = vld [vmem:[%s5723_s2 + $0x40] sm:$0xff]  ;;  %v5439_v24 = vmov 0  }
  0xc7   : > { %v5729_v52 = vpack.c.bf16 %v883_v47, %v878_v46  ;;  %v5731_v53 = vpack.c.bf16 %v885_v49, %v880_v48  ;;  %v4725_v54 = vld [vmem:[#allocation2 + $0x164] ss:$16 sps:$4 sm:$0xff]   ;;  %v4729_v56 = vld [vmem:[#allocation2 + $0x160] ss:$16 sps:$4 sm:$0xff]   ;;  %v4792_v46 = vld [vmem:[#allocation2 + $0xc] ss:$16 sps:$4 sm:$0xff]  }
  0xc8   : > { %1844 = vmatpush1.bf16.msra.mxu0 %v4693_v26  ;;  %v4727_v55 = vld [vmem:[#allocation2 + $0x364] ss:$16 sps:$4 sm:$0xff]   ;;  %v4730_v57 = vld [vmem:[#allocation2 + $0x360] ss:$16 sps:$4 sm:$0xff]   ;;  %v4763_v26 = vld [vmem:[#allocation2 + $0xa8] ss:$16 sps:$4 sm:$0xff]  }
  0xc9   : > { %1887 = vmatpush1.bf16.msra.mxu1 %v4694_v27  ;;  %1845 = vmatprep.subr.bf16.mxu0 %v4695_v28  ;;  %v4731_v58 = vld [vmem:[#allocation2 + $0x144] ss:$16 sps:$4 sm:$0xff]   ;;  %v4735_v60 = vld [vmem:[#allocation2 + $0x140] ss:$16 sps:$4 sm:$0xff]   ;;  %v4771_v28 = vld [vmem:[#allocation2 + $0x8c] ss:$16 sps:$4 sm:$0xff]  }
  0xca   : > { %1888 = vmatprep.subr.bf16.mxu1 %v4697_v29  ;;  %1863 = vmatprep.mubr.bf16.mxu0 %v5729_v52  ;;  %v4733_v59 = vld [vmem:[#allocation2 + $0x344] ss:$16 sps:$4 sm:$0xff]   ;;  %v4736_v61 = vld [vmem:[#allocation2 + $0x340] ss:$16 sps:$4 sm:$0xff]   ;;  %v4795_v47 = vld [vmem:[#allocation2 + $0x2cc] ss:$16 sps:$4 sm:$0xff]  }
  0xcb   : > { %1906 = vmatprep.mubr.bf16.mxu1 %v5731_v53  ;;  %v4737_v62 = vld [vmem:[#allocation2 + $0x124] ss:$16 sps:$4 sm:$0xff]   ;;  %v4741_v0 = vld [vmem:[#allocation2 + $0x120] ss:$16 sps:$4 sm:$0xff]   ;;  %v4790_v48 = vld [vmem:[#allocation2 + $0x8] ss:$16 sps:$4 sm:$0xff]  }
  0xcc   : > { %1846 = vmatpush1.bf16.msra.mxu0 %v4699_v30  ;;  %v4739_v63 = vld [vmem:[#allocation2 + $0x324] ss:$16 sps:$4 sm:$0xff]   ;;  %v4742_v1 = vld [vmem:[#allocation2 + $0x320] ss:$16 sps:$4 sm:$0xff]   ;;  %v4769_v30 = vld [vmem:[#allocation2 + $0x88] ss:$16 sps:$4 sm:$0xff]  }
  0xcd   : > { %1889 = vmatpush1.bf16.msra.mxu1 %v4700_v31  ;;  %1847 = vmatprep.subr.bf16.mxu0 %v4701_v32  ;;  %v4743_v2 = vld [vmem:[#allocation2 + $0x104] ss:$16 sps:$4 sm:$0xff]   ;;  %v4747_v4 = vld [vmem:[#allocation2 + $0x100] ss:$16 sps:$4 sm:$0xff]   ;;  %v4777_v32 = vld [vmem:[#allocation2 + $0x6c] ss:$16 sps:$4 sm:$0xff]  }
  0xce   : > { %1890 = vmatprep.subr.bf16.mxu1 %v4703_v33  ;;  %v4745_v3 = vld [vmem:[#allocation2 + $0x304] ss:$16 sps:$4 sm:$0xff]   ;;  %v4748_v5 = vld [vmem:[#allocation2 + $0x300] ss:$16 sps:$4 sm:$0xff]   ;;  %v4793_v49 = vld [vmem:[#allocation2 + $0x2c8] ss:$16 sps:$4 sm:$0xff]  }
  0xcf   : > { %v1040_v6 = vld [vmem:[#allocation2 + $0x4a0] sm:$0xff]  ;;  %v879_v9 = vld [vmem:[%s5723_s2 + $0x10] sm:$0xff] }
  0xd0   : > { %1848 = vmatpush2.bf16.msra.mxu0 %v4705_v34  ;;  %v877_v7 = vld [vmem:[%s5723_s2] sm:$0xff]  ;;  %v4079_v11 = vcombine.high %v1040_v6, %v1040_v6  ;;  %v4078_v13 = vcombine.low %v1040_v6, %v1040_v6  ;;  %v5741_v15 = vpack.c.bf16 %v884_v10, %v879_v9  ;;  %v4775_v34 = vld [vmem:[#allocation2 + $0x68] ss:$16 sps:$4 sm:$0xff]   ;;  %v4828_v6 = vld [vmem:[#allocation2 + $0x14c] ss:$16 sps:$4 sm:$0xff]  }
  0xd1   : > { %1891 = vmatpush2.bf16.msra.mxu1 %v4706_v35  ;;  %1849 = vmatprep.subr.bf16.mxu0 %v4707_v36  ;;  %v5739_v14 = vpack.c.bf16 %v882_v8, %v877_v7  ;;  %v4756_v17 = vld [vmem:[#allocation2 + $0x484] ss:$16 sps:$4 sm:$0xff]   ;;  %v4754_v20 = vld [vmem:[#allocation2 + $0x480] ss:$16 sps:$4 sm:$0xff]   ;;  %v4783_v36 = vld [vmem:[#allocation2 + $0x4c] ss:$16 sps:$4 sm:$0xff]  }
  0xd2   : > { %1892 = vmatprep.subr.bf16.mxu1 %v4709_v37  ;;  %v1820_v18 = vsel %vm1818_vm0, %v4078_v13, 0  ;;  %v4762_v22 = vld [vmem:[#allocation2 + $0x464] ss:$16 sps:$4 sm:$0xff]   ;;  %v4760_v25 = vld [vmem:[#allocation2 + $0x460] ss:$16 sps:$4 sm:$0xff]  }
  0xd3   : > { %v4768_v27 = vld [vmem:[#allocation2 + $0x444] ss:$16 sps:$4 sm:$0xff]   ;;  %v4766_v29 = vld [vmem:[#allocation2 + $0x440] ss:$16 sps:$4 sm:$0xff]   ;;  %v4831_v7 = vld [vmem:[#allocation2 + $0x20c] ss:$16 sps:$4 sm:$0xff]  }
  0xd4   : > { %1850 = vmatpush2.bf16.msra.mxu0 %v4711_v38  ;;  %v4774_v31 = vld [vmem:[#allocation2 + $0x424] ss:$16 sps:$4 sm:$0xff]   ;;  %v4772_v33 = vld [vmem:[#allocation2 + $0x420] ss:$16 sps:$4 sm:$0xff]   ;;  %v4781_v38 = vld [vmem:[#allocation2 + $0x48] ss:$16 sps:$4 sm:$0xff]  }
  0xd5   : > { %1893 = vmatpush2.bf16.msra.mxu1 %v4712_v39  ;;  %1851 = vmatprep.subr.bf16.mxu0 %v4713_v40  ;;  %v4780_v35 = vld [vmem:[#allocation2 + $0x404] ss:$16 sps:$4 sm:$0xff]   ;;  %v4778_v37 = vld [vmem:[#allocation2 + $0x400] ss:$16 sps:$4 sm:$0xff]   ;;  %v886_v40 = vld [vmem:[%s5723_s2 + $0x48] sm:$0xff] }
  0xd6   : > { %1894 = vmatprep.subr.bf16.mxu1 %v4715_v41  ;;  %v881_v39 = vld [vmem:[%s5723_s2 + $0x20] sm:$0xff]  ;;  %v4786_v41 = vld [vmem:[#allocation2 + $0x2c] ss:$16 sps:$4 sm:$0xff]   ;;  %v4826_v8 = vld [vmem:[#allocation2 + $0x148] ss:$16 sps:$4 sm:$0xff]   ;;  %s3593_s2 = ssub.s32 (%p6120_p5), 3, %s5716_s27 }
  0xd7   : > { %v4829_v9 = vld [vmem:[#allocation2 + $0x208] ss:$16 sps:$4 sm:$0xff]   ;;  %v4834_v10 = vld [vmem:[#allocation2 + $0x12c] ss:$16 sps:$4 sm:$0xff]   ;;  %p3594_p10 = scmp.lt.s32.totalorder (%p6120_p5), %s3593_s2, 2 }
  0xd8   : > { %1852 = vmatpush2.bf16.msra.mxu0 %v4717_v42  ;;  %v4789_v42 = vld [vmem:[#allocation2 + $0x2ec] ss:$16 sps:$4 sm:$0xff]   ;;  %v4835_v13 = vld [vmem:[#allocation2 + $0x3e8] ss:$16 sps:$4 sm:$0xff]  }
  0xd9   : > { %1895 = vmatpush2.bf16.msra.mxu1 %v4718_v43  ;;  %1853 = vmatprep.subr.bf16.mxu0 %v4719_v44  ;;  %v5751_v43 = vpack.c.bf16 %v886_v40, %v881_v39  ;;  %v4784_v44 = vld [vmem:[#allocation2 + $0x28] ss:$16 sps:$4 sm:$0xff]   ;;  %v4872_v39 = vld [vmem:[#allocation2 + $0x42c] ss:$16 sps:$4 sm:$0xff]  }
  0xda   : > { %1896 = vmatprep.subr.bf16.mxu1 %v4721_v45  ;;  %v4787_v45 = vld [vmem:[#allocation2 + $0x2e8] ss:$16 sps:$4 sm:$0xff]  }
  0xdb   : > { %v4867_v40 = vld [vmem:[#allocation2 + $0x328] ss:$16 sps:$4 sm:$0xff]  }
  0xdc   : > { %1854 = vmatpush2.bf16.msra.mxu0 %v4723_v50  ;;  %v4798_v50 = vld [vmem:[#allocation2 + $0x1ec] ss:$16 sps:$4 sm:$0xff]  }
  0xdd   : > { %1897 = vmatpush2.bf16.msra.mxu1 %v4724_v51  ;;  %1855 = vmatprep.subr.bf16.mxu0 %v4725_v54  ;;  %v4801_v51 = vld [vmem:[#allocation2 + $0x2ac] ss:$16 sps:$4 sm:$0xff]   ;;  %v4799_v54 = vld [vmem:[#allocation2 + $0x2a8] ss:$16 sps:$4 sm:$0xff]  }
  0xde   : > { %1898 = vmatprep.subr.bf16.mxu1 %v4727_v55  ;;  %v4804_v55 = vld [vmem:[#allocation2 + $0x1cc] ss:$16 sps:$4 sm:$0xff]  }
  0xe0   : > { %1856 = vmatpush2.bf16.msra.mxu0 %v4729_v56  ;;  %v4807_v56 = vld [vmem:[#allocation2 + $0x28c] ss:$16 sps:$4 sm:$0xff]  }
  0xe1   : > { %1899 = vmatpush2.bf16.msra.mxu1 %v4730_v57  ;;  %1857 = vmatprep.subr.bf16.mxu0 %v4731_v58  ;;  %v4802_v57 = vld [vmem:[#allocation2 + $0x1c8] ss:$16 sps:$4 sm:$0xff]  }
  0xe2   : > { %1900 = vmatprep.subr.bf16.mxu1 %v4733_v59  ;;  %v4805_v58 = vld [vmem:[#allocation2 + $0x288] ss:$16 sps:$4 sm:$0xff]   ;;  %v4810_v59 = vld [vmem:[#allocation2 + $0x1ac] ss:$16 sps:$4 sm:$0xff]  }
  0xe4   : > { %1858 = vmatpush2.bf16.msra.mxu0 %v4735_v60  ;;  %v4813_v60 = vld [vmem:[#allocation2 + $0x26c] ss:$16 sps:$4 sm:$0xff]  }
  0xe5   : > { %1901 = vmatpush2.bf16.msra.mxu1 %v4736_v61  ;;  %1859 = vmatprep.subr.bf16.mxu0 %v4737_v62  ;;  %v4808_v61 = vld [vmem:[#allocation2 + $0x1a8] ss:$16 sps:$4 sm:$0xff]  }
  0xe6   : > { %1902 = vmatprep.subr.bf16.mxu1 %v4739_v63  ;;  %v4811_v62 = vld [vmem:[#allocation2 + $0x268] ss:$16 sps:$4 sm:$0xff]   ;;  %v4819_v63 = vld [vmem:[#allocation2 + $0x24c] ss:$16 sps:$4 sm:$0xff]  }
  0xe8   : > { %1860 = vmatpush2.bf16.msra.mxu0 %v4741_v0  ;;  %v4814_v0 = vld [vmem:[#allocation2 + $0x188] ss:$16 sps:$4 sm:$0xff]  }
  0xe9   : > { %1903 = vmatpush2.bf16.msra.mxu1 %v4742_v1  ;;  %1861 = vmatprep.subr.bf16.mxu0 %v4743_v2  ;;  %v4817_v1 = vld [vmem:[#allocation2 + $0x248] ss:$16 sps:$4 sm:$0xff]   ;;  %v4822_v2 = vld [vmem:[#allocation2 + $0x16c] ss:$16 sps:$4 sm:$0xff]  }
  0xea   : > { %1904 = vmatprep.subr.bf16.mxu1 %v4745_v3  ;;  %v4825_v3 = vld [vmem:[#allocation2 + $0x22c] ss:$16 sps:$4 sm:$0xff]  }
  0xec   : > { %1862 = vmatpush2.bf16.msra.mxu0 %v4747_v4  ;;  %v4820_v4 = vld [vmem:[#allocation2 + $0x168] ss:$16 sps:$4 sm:$0xff]  }
  0xed   : > { %1905 = vmatpush2.bf16.msra.mxu1 %v4748_v5  ;;  %4082 = vmatprep.subr.msk.bf16.mxu0 %vm1818_vm0, %v4079_v11  ;;  %v4823_v5 = vld [vmem:[#allocation2 + $0x228] ss:$16 sps:$4 sm:$0xff]   ;;  %v4837_v11 = vld [vmem:[#allocation2 + $0x3ec] ss:$16 sps:$4 sm:$0xff]  }
  0xee   : > { %1960 = vmatprep.subr.bf16.mxu1 %v4752_v12  ;;  %v4832_v12 = vld [vmem:[#allocation2 + $0x128] ss:$16 sps:$4 sm:$0xff]  }
  0xef   : > { %1864 = vmatmul.mubr.bf16.vlgmr.msra.gmra.mxu0 %v5739_v14 }
  0xf0   : > { %1907 = vmatmul.mubr.bf16.vlgmr.msra.gmra.mxu1 %v5741_v15  ;;  %1922 = vmatpush1.bf16.msra.mxu0 %v1820_v18  ;;  %v1041_v18 = vld [vmem:[#allocation2 + $0x4a8] sm:$0xff] }
  0xf1   : > { %1961 = vmatpush1.bf16.msra.mxu1 %v4750_v16  ;;  %1923 = vmatprep.subr.bf16.mxu0 %v4756_v17  ;;  %v4840_v16 = vld [vmem:[#allocation2 + $0x10c] ss:$16 sps:$4 sm:$0xff]  }
  0xf2   : > { %1962 = vmatprep.subr.bf16.mxu1 %v4759_v19  ;;  %1949 = vmatprep.mubr.bf16.mxu0 %v5439_v24  ;;  %v4843_v17 = vld [vmem:[#allocation2 + $0x3cc] ss:$16 sps:$4 sm:$0xff]   ;;  %v4838_v19 = vld [vmem:[#allocation2 + $0x108] ss:$16 sps:$4 sm:$0xff]  }
  0xf3   : > { %1992 = vmatprep.mubr.bf16.mxu1 %v5729_v52  ;;  %v4796_v52 = vld [vmem:[#allocation2 + $0x1e8] ss:$16 sps:$4 sm:$0xff]  }
  0xf4   : > { %1924 = vmatpush1.bf16.msra.mxu0 %v4754_v20  ;;  %v4841_v20 = vld [vmem:[#allocation2 + $0x3c8] ss:$16 sps:$4 sm:$0xff]  }
  0xf5   : > { %1963 = vmatpush1.bf16.msra.mxu1 %v4757_v21  ;;  %1925 = vmatprep.subr.bf16.mxu0 %v4762_v22  ;;  %v4846_v21 = vld [vmem:[#allocation2 + $0x3ac] ss:$16 sps:$4 sm:$0xff]   ;;  %v4080_v22 = vcombine.low %v1041_v18, %v1041_v18 }
  0xf6   : > { %1964 = vmatprep.subr.bf16.mxu1 %v4765_v23  ;;  %v4081_v23 = vcombine.high %v1041_v18, %v1041_v18  ;;  %v4945_v18 = vld [vmem:[#allocation6 + $0x110] ss:$8 sps:$4 sm:$0xff]  }
  0xf8   : > { %1926 = vmatpush1.bf16.msra.mxu0 %v4760_v25  ;;  %v4844_v25 = vld [vmem:[#allocation2 + $0x3a8] ss:$16 sps:$4 sm:$0xff]  }
  0xf9   : > { %1965 = vmatpush1.bf16.msra.mxu1 %v4763_v26  ;;  %1927 = vmatprep.subr.bf16.mxu0 %v4768_v27  ;;  %v4851_v26 = vld [vmem:[#allocation2 + $0x38c] ss:$16 sps:$4 sm:$0xff]  }
  0xfa   : > { %1966 = vmatprep.subr.bf16.mxu1 %v4771_v28  ;;  %v4854_v27 = vld [vmem:[#allocation2 + $0x48c] ss:$16 sps:$4 sm:$0xff]   ;;  %v1826_v28 = vsel %vm1818_vm0, %v4080_v22, 0 }
  0xfb   : > { %v4948_v22 = vld [vmem:[#allocation6 + $0x100] ss:$8 sps:$4 sm:$0xff]  }
  0xfc   : > { %1928 = vmatpush1.bf16.msra.mxu0 %v4766_v29  ;;  %v4849_v29 = vld [vmem:[#allocation2 + $0x388] ss:$16 sps:$4 sm:$0xff]  }
  0xfd   : > { %1967 = vmatpush1.bf16.msra.mxu1 %v4769_v30  ;;  %1929 = vmatprep.subr.bf16.mxu0 %v4774_v31  ;;  %v4852_v30 = vld [vmem:[#allocation2 + $0x488] ss:$16 sps:$4 sm:$0xff]   ;;  %v4857_v31 = vld [vmem:[#allocation2 + $0x36c] ss:$16 sps:$4 sm:$0xff]  }
  0xfe   : > { %1968 = vmatprep.subr.bf16.mxu1 %v4777_v32  ;;  %v4860_v32 = vld [vmem:[#allocation2 + $0x46c] ss:$16 sps:$4 sm:$0xff]  }
 0x100   : > { %1930 = vmatpush1.bf16.msra.mxu0 %v4772_v33  ;;  %v4855_v33 = vld [vmem:[#allocation2 + $0x368] ss:$16 sps:$4 sm:$0xff]  }
 0x101   : > { %1969 = vmatpush1.bf16.msra.mxu1 %v4775_v34  ;;  %1931 = vmatprep.subr.bf16.mxu0 %v4780_v35  ;;  %v4858_v34 = vld [vmem:[#allocation2 + $0x468] ss:$16 sps:$4 sm:$0xff]   ;;  %v4863_v35 = vld [vmem:[#allocation2 + $0x34c] ss:$16 sps:$4 sm:$0xff]  }
 0x102   : > { %1970 = vmatprep.subr.bf16.mxu1 %v4783_v36  ;;  %v4866_v36 = vld [vmem:[#allocation2 + $0x44c] ss:$16 sps:$4 sm:$0xff]  }
 0x104   : > { %1932 = vmatpush1.bf16.msra.mxu0 %v4778_v37  ;;  %v4861_v37 = vld [vmem:[#allocation2 + $0x348] ss:$16 sps:$4 sm:$0xff]  }
 0x105   : > { %1971 = vmatpush1.bf16.msra.mxu1 %v4781_v38  ;;  %2003 = vmatprep.subr.bf16.mxu0 %v4789_v42  ;;  %v4869_v38 = vld [vmem:[#allocation2 + $0x32c] ss:$16 sps:$4 sm:$0xff]  }
 0x106   : > { %1972 = vmatprep.subr.bf16.mxu1 %v4786_v41  ;;  %v4870_v41 = vld [vmem:[#allocation2 + $0x428] ss:$16 sps:$4 sm:$0xff]   ;;  %v4875_v42 = vld [vmem:[#allocation2 + $0x30c] ss:$16 sps:$4 sm:$0xff]  }
 0x107   : > { %4083 = vmatmul.mubr.msk.bf16.vlgmr.msra.gmra.mxu0 %vm1814_vm1, %v5751_v43 }
 0x108   : > { %2004 = vmatpush1.bf16.msra.mxu0 %v4787_v45  ;;  %2035 = vmatprep.mubr.bf16.mxu0 %v5731_v53  ;;  %v4816_v53 = vld [vmem:[#allocation2 + $0x18c] ss:$16 sps:$4 sm:$0xff]   ;;  %v4876_v45 = vld [vmem:[#allocation2 + $0x408] ss:$16 sps:$4 sm:$0xff]  }
 0x109   : > { %1973 = vmatpush1.bf16.msra.mxu1 %v4784_v44  ;;  %2005 = vmatprep.subr.bf16.mxu0 %v4795_v47  ;;  %v4878_v44 = vld [vmem:[#allocation2 + $0x40c] ss:$16 sps:$4 sm:$0xff]  }
 0x10a   : > { %1974 = vmatprep.subr.bf16.mxu1 %v4792_v46  ;;  %v4881_v46 = vld [vmem:[#allocation6 + $0x74] ss:$8 sps:$4 sm:$0xff]   ;;  %v4879_v47 = vld [vmem:[#allocation6 + $0x70] ss:$8 sps:$4 sm:$0xff]  }
 0x10c   : > { %2006 = vmatpush1.bf16.msra.mxu0 %v4793_v49  ;;  %v4882_v49 = vld [vmem:[#allocation6 + $0x60] ss:$8 sps:$4 sm:$0xff]  }
 0x10d   : > { %1975 = vmatpush1.bf16.msra.mxu1 %v4790_v48  ;;  %2007 = vmatprep.subr.bf16.mxu0 %v4801_v51  ;;  %v4884_v48 = vld [vmem:[#allocation6 + $0x64] ss:$8 sps:$4 sm:$0xff]   ;;  %v4885_v51 = vld [vmem:[#allocation6 + $0x50] ss:$8 sps:$4 sm:$0xff]  }
 0x10e   : > { %1976 = vmatprep.subr.bf16.mxu1 %v4798_v50  ;;  %v4887_v50 = vld [vmem:[#allocation6 + $0x54] ss:$8 sps:$4 sm:$0xff]  }
 0x110   : > { %2008 = vmatpush1.bf16.msra.mxu0 %v4799_v54  ;;  %v4888_v54 = vld [vmem:[#allocation6 + $0x40] ss:$8 sps:$4 sm:$0xff]  }
 0x111   : > { %1977 = vmatpush2.bf16.msra.mxu1 %v4796_v52  ;;  %2009 = vmatprep.subr.bf16.mxu0 %v4807_v56  ;;  %v4890_v52 = vld [vmem:[#allocation6 + $0x44] ss:$8 sps:$4 sm:$0xff]   ;;  %v4891_v56 = vld [vmem:[#allocation6 + $0x30] ss:$8 sps:$4 sm:$0xff]  }
 0x112   : > { %1978 = vmatprep.subr.bf16.mxu1 %v4804_v55  ;;  %v4893_v55 = vld [vmem:[#allocation6 + $0x34] ss:$8 sps:$4 sm:$0xff]  }
 0x114   : > { %2010 = vmatpush1.bf16.msra.mxu0 %v4805_v58  ;;  %v4929_v58 = vld [vmem:[#allocation6 + $0x174] ss:$8 sps:$4 sm:$0xff]  }
 0x115   : > { %1979 = vmatpush2.bf16.msra.mxu1 %v4802_v57  ;;  %2011 = vmatprep.subr.bf16.mxu0 %v4813_v60  ;;  %v4896_v57 = vld [vmem:[#allocation6 + $0x24] ss:$8 sps:$4 sm:$0xff]   ;;  %v4899_v60 = vld [vmem:[#allocation6 + $0x14] ss:$8 sps:$4 sm:$0xff]  }
 0x116   : > { %1980 = vmatprep.subr.bf16.mxu1 %v4810_v59  ;;  %v4932_v59 = vld [vmem:[#allocation6 + $0x164] ss:$8 sps:$4 sm:$0xff]  }
 0x118   : > { %2012 = vmatpush1.bf16.msra.mxu0 %v4811_v62  ;;  %v4935_v62 = vld [vmem:[#allocation6 + $0x154] ss:$8 sps:$4 sm:$0xff]  }
 0x119   : > { %1981 = vmatpush2.bf16.msra.mxu1 %v4808_v61  ;;  %2013 = vmatprep.subr.bf16.mxu0 %v4819_v63  ;;  %v4930_v61 = vld [vmem:[#allocation6 + $0x160] ss:$8 sps:$4 sm:$0xff]   ;;  %v4933_v63 = vld [vmem:[#allocation6 + $0x150] ss:$8 sps:$4 sm:$0xff]  }
 0x11a   : > { %1982 = vmatprep.subr.bf16.mxu1 %v4816_v53  ;;  %v4897_v53 = vld [vmem:[#allocation6 + $0x10] ss:$8 sps:$4 sm:$0xff]  }
 0x11c   : > { %2014 = vmatpush1.bf16.msra.mxu0 %v4817_v1  ;;  %v4938_v1 = vld [vmem:[#allocation6 + $0x144] ss:$8 sps:$4 sm:$0xff]  }
 0x11d   : > { %1983 = vmatpush2.bf16.msra.mxu1 %v4814_v0  ;;  %2015 = vmatprep.subr.bf16.mxu0 %v4825_v3  ;;  %v4902_v0 = vld [vmem:[#allocation6 + $0x4] ss:$8 sps:$4 sm:$0xff]   ;;  %v4936_v3 = vld [vmem:[#allocation6 + $0x140] ss:$8 sps:$4 sm:$0xff]  }
 0x11e   : > { %1984 = vmatprep.subr.bf16.mxu1 %v4822_v2  ;;  %v4900_v2 = vld [vmem:[#allocation6] ss:$8 sps:$4 sm:$0xff]  }
 0x120   : > { %2016 = vmatpush1.bf16.msra.mxu0 %v4823_v5  ;;  %v4941_v5 = vld [vmem:[#allocation6 + $0x134] ss:$8 sps:$4 sm:$0xff]  }
 0x121   : > { %1985 = vmatpush2.bf16.msra.mxu1 %v4820_v4  ;;  %2017 = vmatprep.subr.bf16.mxu0 %v4831_v7  ;;  %v4905_v4 = vld [vmem:[#allocation6 + $0xf4] ss:$8 sps:$4 sm:$0xff]   ;;  %v4939_v7 = vld [vmem:[#allocation6 + $0x130] ss:$8 sps:$4 sm:$0xff]  }
 0x122   : > { %1986 = vmatprep.subr.bf16.mxu1 %v4828_v6  ;;  %v4903_v6 = vld [vmem:[#allocation6 + $0xf0] ss:$8 sps:$4 sm:$0xff]  }
 0x124   : > { %2018 = vmatpush1.bf16.msra.mxu0 %v4829_v9  ;;  %v4944_v9 = vld [vmem:[#allocation6 + $0x124] ss:$8 sps:$4 sm:$0xff]  }
 0x125   : > { %1987 = vmatpush2.bf16.msra.mxu1 %v4826_v8  ;;  %2019 = vmatprep.subr.bf16.mxu0 %v4837_v11  ;;  %v4908_v8 = vld [vmem:[#allocation6 + $0xe4] ss:$8 sps:$4 sm:$0xff]   ;;  %v4942_v11 = vld [vmem:[#allocation6 + $0x120] ss:$8 sps:$4 sm:$0xff]  }
 0x126   : > { %1988 = vmatprep.subr.bf16.mxu1 %v4834_v10  ;;  %v4906_v10 = vld [vmem:[#allocation6 + $0xe0] ss:$8 sps:$4 sm:$0xff]  }
 0x128   : > { %2020 = vmatpush2.bf16.msra.mxu0 %v4835_v13  ;;  %v4909_v13 = vld [vmem:[#allocation6 + $0xd0] ss:$8 sps:$4 sm:$0xff]  }
 0x129   : > { %1989 = vmatpush2.bf16.msra.mxu1 %v4832_v12  ;;  %2021 = vmatprep.subr.bf16.mxu0 %v4843_v17  ;;  %v4911_v12 = vld [vmem:[#allocation6 + $0xd4] ss:$8 sps:$4 sm:$0xff]  }
 0x12a   : > { %1990 = vmatprep.subr.bf16.mxu1 %v4840_v16  ;;  %v4914_v16 = vld [vmem:[#allocation6 + $0xc4] ss:$8 sps:$4 sm:$0xff]   ;;  %v4947_v17 = vld [vmem:[#allocation6 + $0x114] ss:$8 sps:$4 sm:$0xff]  }
 0x12c   : > { %2022 = vmatpush2.bf16.msra.mxu0 %v4841_v20  ;;  %v4917_v20 = vld [vmem:[#allocation6 + $0xb4] ss:$8 sps:$4 sm:$0xff]  }
 0x12d   : > { %1991 = vmatpush2.bf16.msra.mxu1 %v4838_v19  ;;  %2023 = vmatprep.subr.bf16.mxu0 %v4846_v21  ;;  %v4912_v19 = vld [vmem:[#allocation6 + $0xc0] ss:$8 sps:$4 sm:$0xff]   ;;  %v4950_v21 = vld [vmem:[#allocation6 + $0x104] ss:$8 sps:$4 sm:$0xff]  }
 0x12e   : > { %4084 = vmatprep.subr.msk.bf16.mxu1 %vm1818_vm0, %v4081_v23  ;;  %v4915_v23 = vld [vmem:[#allocation6 + $0xb0] ss:$8 sps:$4 sm:$0xff]  }
 0x130   : > { %1993 = vmatmul.mubr.bf16.vlgmr.msra.gmra.mxu1 %v5739_v14  ;;  %2024 = vmatpush2.bf16.msra.mxu0 %v4844_v25  ;;  %v4864_v14 = vld [vmem:[#allocation2 + $0x448] ss:$16 sps:$4 sm:$0xff]  }
 0x131   : > { %2051 = vmatpush1.bf16.msra.mxu1 %v1826_v28  ;;  %2025 = vmatprep.subr.bf16.mxu0 %v4851_v26  ;;  %v4920_v25 = vld [vmem:[#allocation6 + $0xa4] ss:$8 sps:$4 sm:$0xff]   ;;  %v4953_v26 = vld [vmem:[#allocation6 + $0x1f4] ss:$8 sps:$4 sm:$0xff]  }
 0x132   : > { %2052 = vmatprep.subr.bf16.mxu1 %v4854_v27  ;;  %2078 = vmatprep.mubr.bf16.mxu1 %v5439_v24  ;;  %v4873_v24 = vld [vmem:[#allocation2 + $0x308] ss:$16 sps:$4 sm:$0xff]   ;;  %v4951_v27 = vld [vmem:[#allocation6 + $0x1f0] ss:$8 sps:$4 sm:$0xff]  }
 0x133   : > { %v4956_v28 = vld [vmem:[#allocation6 + $0x1e4] ss:$8 sps:$4 sm:$0xff]  }
 0x134   : > { %2026 = vmatpush2.bf16.msra.mxu0 %v4849_v29  ;;  %v4918_v29 = vld [vmem:[#allocation6 + $0xa0] ss:$8 sps:$4 sm:$0xff]  }
 0x135   : > { %2053 = vmatpush1.bf16.msra.mxu1 %v4852_v30  ;;  %2027 = vmatprep.subr.bf16.mxu0 %v4857_v31  ;;  %v4954_v30 = vld [vmem:[#allocation6 + $0x1e0] ss:$8 sps:$4 sm:$0xff]   ;;  %v4923_v31 = vld [vmem:[#allocation6 + $0x94] ss:$8 sps:$4 sm:$0xff]  }
 0x136   : > { %2054 = vmatprep.subr.bf16.mxu1 %v4860_v32  ;;  %v4959_v32 = vld [vmem:[#allocation6 + $0x1d4] ss:$8 sps:$4 sm:$0xff]  }
 0x138   : > { %2028 = vmatpush2.bf16.msra.mxu0 %v4855_v33  ;;  %v4921_v33 = vld [vmem:[#allocation6 + $0x90] ss:$8 sps:$4 sm:$0xff]  }
 0x139   : > { %2055 = vmatpush1.bf16.msra.mxu1 %v4858_v34  ;;  %2029 = vmatprep.subr.bf16.mxu0 %v4863_v35  ;;  %v4957_v34 = vld [vmem:[#allocation6 + $0x1d0] ss:$8 sps:$4 sm:$0xff]   ;;  %v4926_v35 = vld [vmem:[#allocation6 + $0x84] ss:$8 sps:$4 sm:$0xff]  }
 0x13a   : > { %2056 = vmatprep.subr.bf16.mxu1 %v4866_v36  ;;  %v4962_v36 = vld [vmem:[#allocation6 + $0x1c4] ss:$8 sps:$4 sm:$0xff]  }
 0x13c   : > { %2030 = vmatpush2.bf16.msra.mxu0 %v4861_v37  ;;  %v4924_v37 = vld [vmem:[#allocation6 + $0x80] ss:$8 sps:$4 sm:$0xff]  }
 0x13d   : > { %2057 = vmatpush1.bf16.msra.mxu1 %v4864_v14  ;;  %2031 = vmatprep.subr.bf16.mxu0 %v4869_v38  ;;  %v4960_v14 = vld [vmem:[#allocation6 + $0x1c0] ss:$8 sps:$4 sm:$0xff]   ;;  %v4965_v38 = vld [vmem:[#allocation6 + $0x1b4] ss:$8 sps:$4 sm:$0xff]  }
 0x13e   : > { %2058 = vmatprep.subr.bf16.mxu1 %v4872_v39  ;;  %v4963_v39 = vld [vmem:[#allocation6 + $0x1b0] ss:$8 sps:$4 sm:$0xff]  }
 0x140   : > { %2032 = vmatpush2.bf16.msra.mxu0 %v4867_v40  ;;  %v4968_v40 = vld [vmem:[#allocation6 + $0x1a4] ss:$8 sps:$4 sm:$0xff]  }
 0x141   : > { %2059 = vmatpush1.bf16.msra.mxu1 %v4870_v41  ;;  %2033 = vmatprep.subr.bf16.mxu0 %v4875_v42  ;;  %v4966_v41 = vld [vmem:[#allocation6 + $0x1a0] ss:$8 sps:$4 sm:$0xff]   ;;  %v4971_v42 = vld [vmem:[#allocation6 + $0x194] ss:$8 sps:$4 sm:$0xff]  }
 0x142   : > { %2060 = vmatprep.subr.bf16.mxu1 %v4878_v44  ;;  %v4969_v44 = vld [vmem:[#allocation6 + $0x190] ss:$8 sps:$4 sm:$0xff]  }
 0x144   : > { %2034 = vmatpush2.bf16.msra.mxu0 %v4873_v24  ;;  %v4974_v24 = vld [vmem:[#allocation6 + $0x184] ss:$8 sps:$4 sm:$0xff]  }
 0x145   : > { %2061 = vmatpush1.bf16.msra.mxu1 %v4876_v45  ;;  %2497 = vmatprep.subr.bf16.mxu0 %v4881_v46  ;;  %v4972_v45 = vld [vmem:[#allocation6 + $0x180] ss:$8 sps:$4 sm:$0xff]   ;;  %v1044_v46 = vlaneseq }
 0x146   : > { %2540 = vmatprep.subr.bf16.mxu1 %v4929_v58 }
 0x147   : > { %2036 = vmatmul.mubr.bf16.vlgmr.msra.gmra.mxu0 %v5741_v15  ;;  %v4927_v15 = vld [vmem:[#allocation6 + $0x170] ss:$8 sps:$4 sm:$0xff]  }
 0x148   : > { %4085 = vmatmul.mubr.msk.bf16.vlgmr.msra.gmra.mxu1 %vm1814_vm1, %v5751_v43  ;;  %2498 = vmatpush1.bf16.msra.mxu0 %v4879_v47  ;;  %v4894_v43 = vld [vmem:[#allocation6 + $0x20] ss:$8 sps:$4 sm:$0xff]  }
 0x149   : > { %2499 = vmatprep.subr.bf16.mxu0 %v4884_v48  ;;  %2541 = vmatpush1.bf16.msra.mxu1 %v4927_v15  ;;  %v5763_v48 = vshrl.u32 %v1044_v46, 7 }
 0x14a   : > { %2542 = vmatprep.subr.bf16.mxu1 %v4932_v59 }
 0x14c   : > { %2500 = vmatpush1.bf16.msra.mxu0 %v4882_v49 }
 0x14d   : > { %2501 = vmatprep.subr.bf16.mxu0 %v4887_v50  ;;  %2543 = vmatpush1.bf16.msra.mxu1 %v4930_v61  ;;  %v1050_v50 = vsub.s32 1, %v5763_v48 }
 0x14e   : > { %2544 = vmatprep.subr.bf16.mxu1 %v4935_v62 }
 0x150   : > { %2502 = vmatpush1.bf16.msra.mxu0 %v4885_v51  ;;  %v1042_v51 = vld [vmem:[#allocation4] sm:$0xf] }
 0x151   : > { %2503 = vmatprep.subr.bf16.mxu0 %v4890_v52  ;;  %2545 = vmatpush1.bf16.msra.mxu1 %v4933_v63  ;;  %v1046_v52 = vsub.s32 0, %v5763_v48 }
 0x152   : > { %2546 = vmatprep.subr.bf16.mxu1 %v4938_v1 }
 0x154   : > { %2504 = vmatpush1.bf16.msra.mxu0 %v4888_v54 }
 0x155   : > { %2505 = vmatprep.subr.bf16.mxu0 %v4893_v55  ;;  %2547 = vmatpush1.bf16.msra.mxu1 %v4936_v3 }
 0x156   : > { %2548 = vmatprep.subr.bf16.mxu1 %v4941_v5 }
 0x158   : > { %2506 = vmatpush1.bf16.msra.mxu0 %v4891_v56  ;;  %v1051_v56 = vrot.slane %v1042_v51, %v1050_v50 }
 0x159   : > { %2507 = vmatprep.subr.bf16.mxu0 %v4896_v57  ;;  %2549 = vmatpush1.bf16.msra.mxu1 %v4939_v7  ;;  %v1047_v57 = vrot.slane %v1042_v51, %v1046_v52 }
 0x15a   : > { %2550 = vmatprep.subr.bf16.mxu1 %v4944_v9 }
 0x15c   : > { %2508 = vmatpush1.bf16.msra.mxu0 %v4894_v43 }
 0x15d   : > { %2509 = vmatprep.subr.bf16.mxu0 %v4899_v60  ;;  %2551 = vmatpush1.bf16.msra.mxu1 %v4942_v11 }
 0x15e   : > { %2552 = vmatprep.subr.bf16.mxu1 %v4947_v17 }
 0x160   : > { %2510 = vmatpush1.bf16.msra.mxu0 %v4897_v53 }
 0x161   : > { %2511 = vmatprep.subr.bf16.mxu0 %v4902_v0  ;;  %2553 = vmatpush1.bf16.msra.mxu1 %v4945_v18 }
 0x162   : > { %2554 = vmatprep.subr.bf16.mxu1 %v4950_v21  ;;  %v1058_v21 = vsub.s32 3, %v5763_v48 }
 0x164   : > { %2512 = vmatpush1.bf16.msra.mxu0 %v4900_v2 }
 0x165   : > { %2513 = vmatprep.subr.bf16.mxu0 %v4905_v4  ;;  %2555 = vmatpush1.bf16.msra.mxu1 %v4948_v22  ;;  %v1054_v22 = vsub.s32 2, %v5763_v48 }
 0x166   : > { %2556 = vmatprep.subr.bf16.mxu1 %v4953_v26 }
 0x167   : > { %v1055_v26 = vrot.slane %v1042_v51, %v1054_v22 }
 0x168   : > { %2514 = vmatpush2.bf16.msra.mxu0 %v4903_v6 }
 0x169   : > { %2515 = vmatprep.subr.bf16.mxu0 %v4908_v8  ;;  %2557 = vmatpush2.bf16.msra.mxu1 %v4951_v27 }
 0x16a   : > { %2558 = vmatprep.subr.bf16.mxu1 %v4956_v28 }
 0x16c   : > { %2516 = vmatpush2.bf16.msra.mxu0 %v4906_v10 }
 0x16d   : > { %2517 = vmatprep.subr.bf16.mxu0 %v4911_v12  ;;  %2559 = vmatpush2.bf16.msra.mxu1 %v4954_v30 }
 0x16e   : > { %2560 = vmatprep.subr.bf16.mxu1 %v4959_v32 }
 0x170   : > { %2518 = vmatpush2.bf16.msra.mxu0 %v4909_v13 }
 0x171   : > { %2519 = vmatprep.subr.bf16.mxu0 %v4914_v16  ;;  %2561 = vmatpush2.bf16.msra.mxu1 %v4957_v34 }
 0x172   : > { %2562 = vmatprep.subr.bf16.mxu1 %v4962_v36 }
 0x174   : > { %2520 = vmatpush2.bf16.msra.mxu0 %v4912_v19 }
 0x175   : > { %2521 = vmatprep.subr.bf16.mxu0 %v4917_v20  ;;  %2563 = vmatpush2.bf16.msra.mxu1 %v4960_v14 }
 0x176   : > { %2564 = vmatprep.subr.bf16.mxu1 %v4965_v38 }
 0x178   : > { %2522 = vmatpush2.bf16.msra.mxu0 %v4915_v23 }
 0x179   : > { %2523 = vmatprep.subr.bf16.mxu0 %v4920_v25  ;;  %2565 = vmatpush2.bf16.msra.mxu1 %v4963_v39  ;;  %v1059_v25 = vrot.slane %v1042_v51, %v1058_v21 }
 0x17a   : > { %2566 = vmatprep.subr.bf16.mxu1 %v4968_v40 }
 0x17c   : > { %2524 = vmatpush2.bf16.msra.mxu0 %v4918_v29 }
 0x17d   : > { %2525 = vmatprep.subr.bf16.mxu0 %v4923_v31  ;;  %2567 = vmatpush2.bf16.msra.mxu1 %v4966_v41 }
 0x17e   : > { %2568 = vmatprep.subr.bf16.mxu1 %v4971_v42 }
 0x180   : > { %2526 = vmatpush2.bf16.msra.mxu0 %v4921_v33 }
 0x181   : > { %2527 = vmatprep.subr.bf16.mxu0 %v4926_v35  ;;  %2569 = vmatpush2.bf16.msra.mxu1 %v4969_v44 }
 0x182   : > { %2570 = vmatprep.subr.bf16.mxu1 %v4974_v24 }
 0x184   : > { %2528 = vmatpush2.bf16.msra.mxu0 %v4924_v37 }
 0x185   : > { %2571 = vmatpush2.bf16.msra.mxu1 %v4972_v45 }
 0x1af   : > { %v1865_v47 = vpop.f32.mrf.mxu0 }
 0x1b0   : > { %v1908_v54 = vpop.f32.mrf.mxu1  ;;  %v1866_v60 = vadd.f32 %v1865_v47, %v1047_v57 }
 0x1b1   : > { %v1867_v49 = vpop.f32.mrf.mxu0 }
 0x1b2   : > { %v1910_v15 = vpop.f32.mrf.mxu1  ;;  %v1868_v59 = vadd.f32 %v1867_v49, %v1051_v56  ;;  %v1909_v2 = vadd.f32 %v1908_v54, %v1866_v60  ;;  %v4980_v60 = vld [vmem:[%s6116_s10 + $0x28] sm:$0xff]  }
 0x1b3   : > { %v1869_v55 = vpop.f32.mrf.mxu0 }
 0x1b4   : > { %v1870_v43 = vadd.f32 %v1869_v55, %v1047_v57  ;;  %v1912_v61 = vpop.f32.mrf.mxu1  ;;  %v1911_v0 = vadd.f32 %v1910_v15, %v1868_v59  ;;  %v4975_v57 = vld [vmem:[%s6116_s10 + $0x78] sm:$0xff]   ;;  %v4978_v59 = vld [vmem:[%s6116_s10 + $0x30] sm:$0xff]  }
 0x1b5   : > { %v1871_v58 = vpop.f32.mrf.mxu0  ;;  %v4976_v15 = vld [vmem:[%s6116_s10 + $0x38] sm:$0xff]   ;;  %4248 = vmatprep.subr.bf16.mxu0 %v4975_v57 }
 0x1b6   : > { %v1872_v53 = vadd.f32 %v1871_v58, %v1051_v56  ;;  %v1913_v1 = vadd.f32 %v1912_v61, %v1870_v43  ;;  %v1914_v3 = vpop.f32.mrf.mxu1  ;;  %v4977_v58 = vld [vmem:[%s6116_s10 + $0x70] sm:$0xff]   ;;  %v4979_v43 = vld [vmem:[%s6116_s10 + $0x68] sm:$0xff]   ;;  %v4981_v61 = vld [vmem:[%s6116_s10 + $0x60] sm:$0xff]  }
 0x1b8   : > { %v1915_v5 = vadd.f32 %v1914_v3, %v1872_v53  ;;  %v4983_v53 = vld [vmem:[%s6116_s10 + $0x58] sm:$0xff]   ;;  %v4988_v3 = vld [vmem:[%s6116_s10 + $0x8] sm:$0xff]  }
 0x1c7   : > { %v1951_v62 = vpop.f32.mrf.mxu0 }
 0x1c8   : > { %v1952_v8 = vadd.f32 %v1951_v62, %v1909_v2  ;;  %v4982_v62 = vld [vmem:[%s6116_s10 + $0x20] sm:$0xff]   ;;  %v4987_v2 = vld [vmem:[%s6116_s10 + $0x48] sm:$0xff]  }
 0x1c9   : > { %v1953_v63 = vpop.f32.mrf.mxu0 }
 0x1ca   : > { %v1954_v6 = vadd.f32 %v1953_v63, %v1911_v0  ;;  %v2089_v16 = vmax.f32 %v1952_v8, 0.0  ;;  %v4984_v63 = vld [vmem:[%s6116_s10 + $0x18] sm:$0xff]   ;;  %v4985_v0 = vld [vmem:[%s6116_s10 + $0x50] sm:$0xff]   ;;  %v4992_v8 = vld [vmem:[#allocation7 + $0x30] sm:$0xff]  }
 0x1cb   : > { %v1955_v4 = vpop.f32.mrf.mxu0 }
 0x1cc   : > { %v1956_v7 = vadd.f32 %v1955_v4, %v1913_v1  ;;  %v2090_v12 = vmax.f32 %v1954_v6, 0.0  ;;  %v4986_v1 = vld [vmem:[%s6116_s10 + $0x10] sm:$0xff]   ;;  %v4989_v4 = vld [vmem:[%s6116_s10 + $0x40] sm:$0xff]  }
 0x1cd   : > { %v1957_v9 = vpop.f32.mrf.mxu0  ;;  %v4991_v6 = vld [vmem:[#allocation7 + $0x38] sm:$0xff]  }
 0x1ce   : > { %v1958_v10 = vadd.f32 %v1957_v9, %v1915_v5  ;;  %v2093_v11 = vmax.f32 %v1956_v7, 0.0  ;;  %v4990_v5 = vld [vmem:[%s6116_s10] sm:$0xff]   ;;  %v5440_v7 = vmov 0.0  }
 0x1cf   : > { %4326 = vmatprep.subr.bf16.mxu1 %v5440_v7  ;;  %v4993_v9 = vld [vmem:[#allocation7 + $0x28] sm:$0xff]  }
 0x1d0   : > { %v2094_v13 = vmax.f32 %v1958_v10, 0.0  ;;  %v2097_v18 = vpack.c.bf16 %v2093_v11, %v2089_v16  ;;  %v4994_v10 = vld [vmem:[#allocation7 + $0x20] sm:$0xff]  }
 0x1d2   : > { %v2098_v17 = vpack.c.bf16 %v2094_v13, %v2090_v12  ;;  %v2165_v13 = vld [vmem:[%s6117_s13] sm:$0x3] }
 0x1d4   : > { %2529 = vmatprep.mubr.bf16.mxu0 %v2098_v17  ;;  %v2174_v17 = vrot.slane %v2165_v13, %v1050_v50 }
 0x1d5   : > { %2530 = vmatmul.mubr.bf16.vlgmr.msra.gmra.mxu0 %v2097_v18  ;;  %v2170_v18 = vrot.slane %v2165_v13, %v1046_v52  ;;  %v4995_v52 = vld [vmem:[#allocation7 + $0x18] sm:$0xff]  }
 0x1d6   : > { %4249 = vmatpush3.bf16.msra.mxu0 %v4976_v15 }
 0x1d7   : > { %4250 = vmatprep.subr.bf16.mxu0 %v4977_v58  ;;  %v5003_v58 = vld [vmem:[#allocation13 + $0x38] sm:$0xff]  }
 0x1da   : > { %4251 = vmatpush3.bf16.msra.mxu0 %v4978_v59 }
 0x1db   : > { %4252 = vmatprep.subr.bf16.mxu0 %v4979_v43  ;;  %v5005_v43 = vld [vmem:[#allocation13 + $0x30] sm:$0xff]  }
 0x1de   : > { %4253 = vmatpush3.bf16.msra.mxu0 %v4980_v60  ;;  %v5006_v60 = vld [vmem:[%s6050_s9 + $0x10] sm:$0xff]  }
 0x1df   : > { %4254 = vmatprep.subr.bf16.mxu0 %v4981_v61  ;;  %v5007_v61 = vld [vmem:[#allocation13 + $0x28] sm:$0xff]  }
 0x1e2   : > { %4255 = vmatpush3.bf16.msra.mxu0 %v4982_v62  ;;  %v5008_v62 = vld [vmem:[%s6050_s9 + $0x8] sm:$0xff]  }
 0x1e3   : > { %4256 = vmatprep.subr.bf16.mxu0 %v4983_v53  ;;  %v5009_v53 = vld [vmem:[#allocation13 + $0x20] sm:$0xff]  }
 0x1e6   : > { %4257 = vmatpush3.bf16.msra.mxu0 %v4984_v63  ;;  %v5010_v63 = vld [vmem:[%s6050_s9] sm:$0xff]  }
 0x1e7   : > { %4258 = vmatprep.subr.bf16.mxu0 %v4985_v0  ;;  %v5011_v0 = vld [vmem:[#allocation13 + $0x18] sm:$0xff]  }
 0x1ea   : > { %4259 = vmatpush3.bf16.msra.mxu0 %v4986_v1  ;;  %v5012_v1 = vld [vmem:[#allocation13 + $0x10] sm:$0xff]  }
 0x1eb   : > { %4260 = vmatprep.subr.bf16.mxu0 %v4987_v2  ;;  %v5013_v2 = vld [vmem:[#allocation13 + $0x8] sm:$0xff]  }
 0x1ee   : > { %4261 = vmatpush3.bf16.msra.mxu0 %v4988_v3  ;;  %v5014_v3 = vld [vmem:[#allocation13] sm:$0xff]  }
 0x1ef   : > { %4262 = vmatprep.subr.bf16.mxu0 %v4989_v4  ;;  %v4167_v4 = vld [vmem:[#allocation9] ss:$0 sm:$0xff] }
 0x1f0   : > { %v1994_v19 = vpop.f32.mrf.mxu1 }
 0x1f1   : > { %v1995_v31 = vadd.f32 %v1994_v19, %v1055_v26 }
 0x1f2   : > { %v1996_v20 = vpop.f32.mrf.mxu1  ;;  %4263 = vmatpush3.bf16.msra.mxu0 %v4990_v5 }
 0x1f3   : > { %v1997_v30 = vadd.f32 %v1996_v20, %v1059_v25  ;;  %4346 = vmatprep.subr.bf16.mxu0 %v5440_v7 }
 0x1f4   : > { %v1998_v23 = vpop.f32.mrf.mxu1 }
 0x1f5   : > { %v1999_v34 = vadd.f32 %v1998_v23, %v1055_v26 }
 0x1f6   : > { %v2000_v27 = vpop.f32.mrf.mxu1 }
 0x1f7   : > { %v2001_v38 = vadd.f32 %v2000_v27, %v1059_v25 }
 0x207   : > { %v2037_v28 = vpop.f32.mrf.mxu0 }
 0x208   : > { %v2080_v29 = vpop.f32.mrf.mxu1  ;;  %v2038_v36 = vadd.f32 %v2037_v28, %v1995_v31 }
 0x209   : > { %v2039_v32 = vpop.f32.mrf.mxu0 }
 0x20a   : > { %v2082_v33 = vpop.f32.mrf.mxu1  ;;  %v2040_v35 = vadd.f32 %v2039_v32, %v1997_v30  ;;  %v2081_v24 = vadd.f32 %v2080_v29, %v2038_v36 }
 0x20b   : > { %v2041_v37 = vpop.f32.mrf.mxu0 }
 0x20c   : > { %v2084_v14 = vpop.f32.mrf.mxu1  ;;  %v2042_v39 = vadd.f32 %v2041_v37, %v1999_v34  ;;  %v2083_v41 = vadd.f32 %v2082_v33, %v2040_v35  ;;  %v2091_v54 = vmax.f32 %v2081_v24, 0.0  ;;  %v4996_v37 = vld [vmem:[#allocation7 + $0x10] sm:$0xff]  }
 0x20d   : > { %v2043_v40 = vpop.f32.mrf.mxu0 }
 0x20e   : > { %v2085_v42 = vadd.f32 %v2084_v14, %v2042_v39  ;;  %v2044_v44 = vadd.f32 %v2043_v40, %v2001_v38  ;;  %v2086_v45 = vpop.f32.mrf.mxu1  ;;  %v2092_v49 = vmax.f32 %v2083_v41, 0.0  ;;  %v4997_v14 = vld [vmem:[#allocation7 + $0x8] sm:$0xff]   ;;  %v4998_v38 = vld [vmem:[#allocation7] sm:$0xff]   ;;  %v5001_v41 = vld [vmem:[%s6050_s9 + $0x28] sm:$0xff]  }
 0x20f   : > { %v4999_v39 = vld [vmem:[%s6050_s9 + $0x38] sm:$0xff]   ;;  %v5000_v40 = vld [vmem:[%s6050_s9 + $0x30] sm:$0xff]  }
 0x210   : > { %v2087_v46 = vadd.f32 %v2086_v45, %v2044_v44  ;;  %v2095_v47 = vmax.f32 %v2085_v42, 0.0  ;;  %v5002_v42 = vld [vmem:[%s6050_s9 + $0x20] sm:$0xff]   ;;  %v5004_v44 = vld [vmem:[%s6050_s9 + $0x18] sm:$0xff]  }
 0x212   : > { %v2096_v51 = vmax.f32 %v2087_v46, 0.0  ;;  %v2099_v56 = vpack.c.bf16 %v2095_v47, %v2091_v54  ;;  %v4150_v47 = vld [vmem:[%s6118_s3] ss:$0 sm:$0xff] }
 0x214   : > { %v2100_v55 = vpack.c.bf16 %v2096_v51, %v2092_v49 }
 0x216   : > { %2572 = vmatprep.mubr.bf16.mxu1 %v2100_v55 }
 0x217   : > { %2573 = vmatmul.mubr.bf16.vlgmr.msra.gmra.mxu1 %v2099_v56 }
 0x218   : > { %4327 = vmatpush3.bf16.msra.mxu1 %v4991_v6  ;;  %4342 = vmatprep.mubr.msk.bf16.mxu1 %vm5441_vm2, %v5440_v7 }
 0x219   : > { %4328 = vmatprep.subr.bf16.mxu1 %v5440_v7 }
 0x21c   : > { %4329 = vmatpush3.bf16.msra.mxu1 %v4992_v8 }
 0x21d   : > { %4330 = vmatprep.subr.bf16.mxu1 %v5440_v7 }
 0x220   : > { %4331 = vmatpush3.bf16.msra.mxu1 %v4993_v9 }
 0x221   : > { %4332 = vmatprep.subr.bf16.mxu1 %v5440_v7 }
 0x224   : > { %4333 = vmatpush3.bf16.msra.mxu1 %v4994_v10 }
 0x225   : > { %4334 = vmatprep.subr.bf16.mxu1 %v5440_v7 }
 0x228   : > { %4335 = vmatpush3.bf16.msra.mxu1 %v4995_v52 }
 0x229   : > { %4336 = vmatprep.subr.bf16.mxu1 %v5440_v7 }
 0x22c   : > { %4337 = vmatpush3.bf16.msra.mxu1 %v4996_v37 }
 0x22d   : > { %4338 = vmatprep.subr.bf16.mxu1 %v5440_v7 }
 0x230   : > { %4339 = vmatpush3.bf16.msra.mxu1 %v4997_v14 }
 0x231   : > { %4340 = vmatprep.subr.bf16.mxu1 %v5440_v7 }
 0x234   : > { %4341 = vmatpush3.bf16.msra.mxu1 %v4998_v38 }
 0x235   : > { %4366 = vmatprep.subr.bf16.mxu1 %v5440_v7 }
 0x295   : > { %v2531_v11 = vpop.f32.mrf.mxu0 }
 0x296   : > { %v2532_v25 = vadd.f32 %v2531_v11, %v2170_v18 }
 0x297   : > { %v2533_v12 = vpop.f32.mrf.mxu0 }
 0x298   : > { %v2534_v22 = vadd.f32 %v2533_v12, %v2174_v17 }
 0x299   : > { %v2535_v16 = vpop.f32.mrf.mxu0 }
 0x29a   : > { %v2536_v23 = vadd.f32 %v2535_v16, %v2170_v18 }
 0x29b   : > { %v2537_v20 = vpop.f32.mrf.mxu0 }
 0x29c   : > { %v2538_v27 = vadd.f32 %v2537_v20, %v2174_v17  ;;  %v5015_v20 = vld [vmem:[#allocation16 + $0x38] sm:$0xff]  }
 0x2d7   : > { %v2574_v19 = vpop.f32.mrf.mxu1 }
 0x2d8   : > { %v2575_v30 = vadd.f32 %v2574_v19, %v2532_v25  ;;  %v5019_v25 = vld [vmem:[#allocation16 + $0x18] sm:$0xff]  }
 0x2d9   : > { %v2576_v21 = vpop.f32.mrf.mxu1 }
 0x2da   : > { %v2577_v28 = vadd.f32 %v2576_v21, %v2534_v22  ;;  %v2583_v50 = vmax.f32 %v2575_v30, 0.0  ;;  %v5016_v21 = vld [vmem:[#allocation16 + $0x30] sm:$0xff]   ;;  %v5017_v22 = vld [vmem:[#allocation16 + $0x28] sm:$0xff]  }
 0x2db   : > { %v2578_v26 = vpop.f32.mrf.mxu1  ;;  %v5024_v30 = vld [vmem:[%s6058_s17 + $0x30] sm:$0xff]  }
 0x2dc   : > { %v2579_v29 = vadd.f32 %v2578_v26, %v2536_v23  ;;  %v2584_v34 = vmax.f32 %v2577_v28, 0.0  ;;  %v5018_v23 = vld [vmem:[#allocation16 + $0x20] sm:$0xff]   ;;  %v5020_v26 = vld [vmem:[#allocation16 + $0x10] sm:$0xff]  }
 0x2dd   : > { %v2580_v31 = vpop.f32.mrf.mxu1  ;;  %v5022_v28 = vld [vmem:[#allocation16] sm:$0xff]  }
 0x2de   : > { %v2581_v32 = vadd.f32 %v2580_v31, %v2538_v27  ;;  %v2585_v33 = vmax.f32 %v2579_v29, 0.0  ;;  %v5021_v27 = vld [vmem:[#allocation16 + $0x8] sm:$0xff]   ;;  %v5023_v29 = vld [vmem:[%s6058_s17 + $0x38] sm:$0xff]  }
 0x2df   : > { %v5025_v31 = vld [vmem:[%s6058_s17 + $0x28] sm:$0xff]  }
 0x2e0   : > { %v2586_v35 = vmax.f32 %v2581_v32, 0.0  ;;  %v2587_v48 = vpack.c.bf16 %v2585_v33, %v2583_v50  ;;  %v5026_v32 = vld [vmem:[%s6058_s17 + $0x20] sm:$0xff]   ;;  %v5027_v33 = vld [vmem:[%s6058_s17 + $0x18] sm:$0xff]  }
 0x2e2   : > { %v2588_v36 = vpack.c.bf16 %v2586_v35, %v2584_v34  ;;  %v4176_v34 = vld [vmem:[#allocation10] ss:$0 sm:$0xff] }
 0x2e4   : > { %2756 = vmatprep.mubr.bf16.mxu0 %v2588_v36 }
 0x2e5   : > { %2757 = vmatmul.mubr.bf16.vlgmr.msra.gmra.mxu0 %v2587_v48 }
 0x2e6   : > { %4362 = vmatprep.mubr.msk.bf16.mxu0 %vm5441_vm2, %v5440_v7  ;;  %4347 = vmatpush3.bf16.msra.mxu0 %v4999_v39 }
 0x2e7   : > { %4348 = vmatprep.subr.bf16.mxu0 %v5440_v7 }
 0x2ea   : > { %4349 = vmatpush3.bf16.msra.mxu0 %v5000_v40  ;;  %v4185_v40 = vld [vmem:[#allocation15] ss:$0 sm:$0xff] }
 0x2eb   : > { %4350 = vmatprep.subr.bf16.mxu0 %v5440_v7 }
 0x2ee   : > { %4351 = vmatpush3.bf16.msra.mxu0 %v5001_v41 }
 0x2ef   : > { %4352 = vmatprep.subr.bf16.mxu0 %v5440_v7 }
 0x2f2   : > { %4353 = vmatpush3.bf16.msra.mxu0 %v5002_v42 }
 0x2f3   : > { %4354 = vmatprep.subr.bf16.mxu0 %v5440_v7 }
 0x2f6   : > { %4355 = vmatpush3.bf16.msra.mxu0 %v5004_v44 }
 0x2f7   : > { %4356 = vmatprep.subr.bf16.mxu0 %v5440_v7 }
 0x2fa   : > { %4357 = vmatpush3.bf16.msra.mxu0 %v5006_v60 }
 0x2fb   : > { %4358 = vmatprep.subr.bf16.mxu0 %v5440_v7 }
 0x2fe   : > { %4359 = vmatpush3.bf16.msra.mxu0 %v5008_v62 }
 0x2ff   : > { %4360 = vmatprep.subr.bf16.mxu0 %v5440_v7 }
 0x302   : > { %4361 = vmatpush3.bf16.msra.mxu0 %v5010_v63  ;;  %v5028_v63 = vld [vmem:[%s6058_s17 + $0x10] sm:$0xff]  }
 0x303   : > { %4386 = vmatprep.subr.bf16.mxu0 %v5440_v7 }
 0x3a5   : > { %v4264_v24 = vpop.f32.mrf.mxu0 }
 0x3a7   : > { %v4265_v45 = vpop.f32.mrf.mxu0 }
 0x3a8   : > { %v4266_v46 = vadd.f32 %v4265_v45, %v4264_v24 }
 0x3a9   : > { %v4267_v49 = vpop.f32.mrf.mxu0 }
 0x3aa   : > { %v5865_v54 = vadd.f32 %v4266_v46, %v4150_v47 }
 0x3ab   : > { %v4268_v51 = vpop.f32.mrf.mxu0 }
 0x3ac   : > { %v4269_v55 = vadd.f32 %v4268_v51, %v4267_v49  ;;  %v2765_v57 = vmax.f32 %v5865_v54, 0.0  ;;  %v5029_v54 = vld [vmem:[%s6058_s17 + $0x8] sm:$0xff]  }
 0x3ae   : > { %v5867_v56 = vadd.f32 %v4269_v55, %v4150_v47 }
 0x3b0   : > { %v2766_v15 = vmax.f32 %v5867_v56, 0.0  ;;  %v5030_v56 = vld [vmem:[%s6058_s17] sm:$0xff]  }
 0x3b2   : > { %v2767_v59 = vpack.c.bf16 %v2766_v15, %v2765_v57 }
 0x3b4   : > { %4343 = vmatmul.mubr.bf16.vlgmr.msra.gmra.mxu1 %v2767_v59 }
 0x3b5   : > { %4367 = vmatpush3.bf16.msra.mxu1 %v5003_v58  ;;  %4382 = vmatprep.mubr.msk.bf16.mxu1 %vm5441_vm2, %v5440_v7 }
 0x3b6   : > { %4368 = vmatprep.subr.bf16.mxu1 %v5440_v7 }
 0x3b9   : > { %4369 = vmatpush3.bf16.msra.mxu1 %v5005_v43 }
 0x3ba   : > { %4370 = vmatprep.subr.bf16.mxu1 %v5440_v7 }
 0x3bd   : > { %4371 = vmatpush3.bf16.msra.mxu1 %v5007_v61 }
 0x3be   : > { %4372 = vmatprep.subr.bf16.mxu1 %v5440_v7 }
 0x3c1   : > { %4373 = vmatpush3.bf16.msra.mxu1 %v5009_v53 }
 0x3c2   : > { %4374 = vmatprep.subr.bf16.mxu1 %v5440_v7 }
 0x3c5   : > { %4375 = vmatpush3.bf16.msra.mxu1 %v5011_v0 }
 0x3c6   : > { %4376 = vmatprep.subr.bf16.mxu1 %v5440_v7 }
 0x3c9   : > { %4377 = vmatpush3.bf16.msra.mxu1 %v5012_v1 }
 0x3ca   : > { %4378 = vmatprep.subr.bf16.mxu1 %v5440_v7 }
 0x3cd   : > { %4379 = vmatpush3.bf16.msra.mxu1 %v5013_v2 }
 0x3ce   : > { %4380 = vmatprep.subr.bf16.mxu1 %v5440_v7 }
 0x3d1   : > { %4381 = vmatpush3.bf16.msra.mxu1 %v5014_v3 }
 0x3d2   : > { %4406 = vmatprep.subr.bf16.mxu1 %v5440_v7 }
 0x474   : > { %v2873_v5 = vpop.f32.mrf.mxu1 }
 0x475   : > { %v2874_v6 = vadd.f32 %v4167_v4, %v2873_v5 }
 0x476   : > { %v4344_v8 = vpop.f32.mrf.mxu1 }
 0x477   : > { %5039 = vtanh.f32 %v2874_v6  ;;  %v2880_v12 = vmax.f32 %v2874_v6, 0.0 }
 0x478   : > { %v2876_v9 = vpop.f32.mrf.mxu1 }
 0x479   : > { %v2877_v10 = vadd.f32 %v4167_v4, %v2876_v9  ;;  %v5031_v9 = vld [vmem:[%s6052_s11 + $0x8] sm:$0xff]  }
 0x47a   : > { %v4345_v11 = vpop.f32.mrf.mxu1 }
 0x47b   : > { %v2881_v13 = vmax.f32 %v2877_v10, 0.0  ;;  %5041 = vtanh.f32 %v2877_v10  ;;  %v5032_v11 = vld [vmem:[%s6052_s11] sm:$0xff]  }
 0x47d   : > { %v2882_v16 = vpack.c.bf16 %v2881_v13, %v2880_v12  ;;  %v5034_v12 = vld [vmem:[%s6060_s19 + $0x10] sm:$0xff]   ;;  %v5035_v13 = vld [vmem:[%s6060_s19 + $0x8] sm:$0xff]  }
 0x47f   : > { %4363 = vmatmul.mubr.bf16.vlgmr.msra.gmra.mxu0 %v2882_v16  ;;  %v5036_v16 = vld [vmem:[%s6060_s19] sm:$0xff]  }
 0x480   : > { %4402 = vmatprep.mubr.msk.bf16.mxu0 %vm5441_vm2, %v5440_v7  ;;  %4387 = vmatpush3.bf16.msra.mxu0 %v5015_v20 }
 0x481   : > { %4388 = vmatprep.subr.bf16.mxu0 %v5440_v7 }
 0x484   : > { %v5040_v17 = vpop.eup %5039  ;;  %4389 = vmatpush3.bf16.msra.mxu0 %v5016_v21 }
 0x485   : > { %4390 = vmatprep.subr.bf16.mxu0 %v5440_v7 }
 0x488   : > { %v5042_v18 = vpop.eup %5041  ;;  %4391 = vmatpush3.bf16.msra.mxu0 %v5017_v22 }
 0x489   : > { %v2885_v19 = vpack.c.bf16 %v5042_v18, %v5040_v17  ;;  %4392 = vmatprep.subr.bf16.mxu0 %v5440_v7  ;;  %v4205_v17 = vld [vmem:[%s6059_s18] ss:$0 sm:$0xff] }
 0x48b   : > { %4383 = vmatmul.mubr.bf16.vlgmr.msra.gmra.mxu1 %v2885_v19 }
 0x48c   : > { %4422 = vmatprep.mubr.msk.bf16.mxu1 %vm5441_vm2, %v5440_v7  ;;  %4393 = vmatpush3.bf16.msra.mxu0 %v5018_v23 }
 0x48d   : > { %4394 = vmatprep.subr.bf16.mxu0 %v5440_v7  ;;  %4407 = vmatpush3.bf16.msra.mxu1 %v5023_v29 }
 0x48e   : > { %4408 = vmatprep.subr.bf16.mxu1 %v5440_v7 }
 0x490   : > { %4395 = vmatpush3.bf16.msra.mxu0 %v5019_v25 }
 0x491   : > { %4396 = vmatprep.subr.bf16.mxu0 %v5440_v7  ;;  %4409 = vmatpush3.bf16.msra.mxu1 %v5024_v30 }
 0x492   : > { %4410 = vmatprep.subr.bf16.mxu1 %v5440_v7 }
 0x494   : > { %4397 = vmatpush3.bf16.msra.mxu0 %v5020_v26 }
 0x495   : > { %4398 = vmatprep.subr.bf16.mxu0 %v5440_v7  ;;  %4411 = vmatpush3.bf16.msra.mxu1 %v5025_v31 }
 0x496   : > { %4412 = vmatprep.subr.bf16.mxu1 %v5440_v7 }
 0x498   : > { %4399 = vmatpush3.bf16.msra.mxu0 %v5021_v27 }
 0x499   : > { %4400 = vmatprep.subr.bf16.mxu0 %v5440_v7  ;;  %4413 = vmatpush3.bf16.msra.mxu1 %v5026_v32  ;;  %v5037_v32 = vld [vmem:[%s6062_s21 + $0x8] sm:$0xff]  }
 0x49a   : > { %4414 = vmatprep.subr.bf16.mxu1 %v5440_v7 }
 0x49c   : > { %4401 = vmatpush3.bf16.msra.mxu0 %v5022_v28 }
 0x49d   : > { %4426 = vmatprep.subr.bf16.mxu0 %v5440_v7  ;;  %4415 = vmatpush3.bf16.msra.mxu1 %v5027_v33  ;;  %v5038_v33 = vld [vmem:[%s6062_s21] sm:$0xff]  }
 0x49e   : > { %4416 = vmatprep.subr.bf16.mxu1 %v5440_v7 }
 0x4a1   : > { %4417 = vmatpush3.bf16.msra.mxu1 %v5028_v63 }
 0x4a2   : > { %4418 = vmatprep.subr.bf16.mxu1 %v5440_v7 }
 0x4a5   : > { %4419 = vmatpush3.bf16.msra.mxu1 %v5029_v54 }
 0x4a6   : > { %4420 = vmatprep.subr.bf16.mxu1 %v5440_v7 }
 0x4a9   : > { %4421 = vmatpush3.bf16.msra.mxu1 %v5030_v56 }
 0x4aa   : > { %4438 = vmatprep.subr.bf16.mxu1 %v5440_v7 }
 0x53f   : > { %v2991_v35 = vpop.f32.mrf.mxu0 }
 0x540   : > { %v2992_v36 = vadd.f32 %v4176_v34, %v2991_v35 }
 0x541   : > { %v4364_v50 = vpop.f32.mrf.mxu0 }
 0x542   : > { %v2998_v14 = vmax.f32 %v2992_v36, 0.0 }
 0x543   : > { %v2994_v48 = vpop.f32.mrf.mxu0 }
 0x544   : > { %v2995_v52 = vadd.f32 %v4176_v34, %v2994_v48  ;;  %v4214_v34 = vld [vmem:[%s6061_s20] ss:$0 sm:$0xff] }
 0x545   : > { %v4365_v37 = vpop.f32.mrf.mxu0 }
 0x546   : > { %v2999_v38 = vmax.f32 %v2995_v52, 0.0 }
 0x548   : > { %v3000_v39 = vpack.c.bf16 %v2999_v38, %v2998_v14 }
 0x54b   : > { %v3106_v41 = vpop.f32.mrf.mxu1 }
 0x54c   : > { %v3107_v42 = vadd.f32 %v4185_v40, %v3106_v41 }
 0x54d   : > { %v4384_v44 = vpop.f32.mrf.mxu1 }
 0x54e   : > { %v4194_v24 = vmul.f32 -1.442695, %v3107_v42 }
 0x54f   : > { %v3109_v45 = vpop.f32.mrf.mxu1 }
 0x550   : > { %5043 = vpow2.f32 %v4194_v24  ;;  %v3110_v46 = vadd.f32 %v4185_v40, %v3109_v45  ;;  %v4224_v40 = vld [vmem:[%s6063_s22] ss:$0 sm:$0xff] }
 0x551   : > { %v4385_v47 = vpop.f32.mrf.mxu1 }
 0x552   : > { %v4195_v49 = vmul.f32 -1.442695, %v3110_v46 }
 0x554   : > { %5045 = vpow2.f32 %v4195_v49 }
 0x55d   : > { %v5044_v51 = vpop.eup %5043 }
 0x55e   : > { %v3119_v55 = vadd.f32 1.0, %v5044_v51 }
 0x560   : > { %5047 = vrcp.f32 %v3119_v55 }
 0x561   : > { %v5046_v58 = vpop.eup %5045 }
 0x562   : > { %v3120_v59 = vadd.f32 1.0, %v5046_v58 }
 0x564   : > { %5049 = vrcp.f32 %v3120_v59 }
 0x56d   : > { %v5048_v43 = vpop.eup %5047 }
 0x56e   : > { %v3125_v61 = vmul.f32 %v5048_v43, %v2765_v57  ;;  %v5033_v57 = vld [vmem:[%s6060_s19 + $0x18] sm:$0xff]  }
 0x571   : > { %v5050_v60 = vpop.eup %5049 }
 0x572   : > { %v3126_v62 = vmul.f32 %v5050_v60, %v2766_v15  ;;  %v4196_v15 = vld [vmem:[%s6057_s16] ss:$0 sm:$0xff] }
 0x574   : > { %v3127_v53 = vpack.c.bf16 %v3126_v62, %v3125_v61 }
 0x576   : > { %4403 = vmatmul.mubr.bf16.vlgmr.msra.gmra.mxu0 %v3127_v53 }
 0x577   : > { %4434 = vmatprep.mubr.msk.bf16.mxu0 %vm5441_vm2, %v5440_v7  ;;  %4427 = vmatpush3.bf16.msra.mxu0 %v5033_v57 }
 0x578   : > { %4428 = vmatprep.subr.bf16.mxu0 %v5440_v7 }
 0x57b   : > { %4429 = vmatpush3.bf16.msra.mxu0 %v5034_v12 }
 0x57c   : > { %4430 = vmatprep.subr.bf16.mxu0 %v5440_v7 }
 0x57f   : > { %4431 = vmatpush3.bf16.msra.mxu0 %v5035_v13 }
 0x580   : > { %4432 = vmatprep.subr.bf16.mxu0 %v5440_v7 }
 0x583   : > { %4433 = vmatpush3.bf16.msra.mxu0 %v5036_v16 }
 0x636   : > { %v3233_v0 = vpop.f32.mrf.mxu0 }
 0x637   : > { %v3234_v2 = vadd.f32 %v4196_v15, %v3233_v0 }
 0x638   : > { %v4404_v1 = vpop.f32.mrf.mxu0 }
 0x639   : > { %v3240_v6 = vmax.f32 %v3234_v2, 0.0 }
 0x63a   : > { %v3236_v3 = vpop.f32.mrf.mxu0 }
 0x63b   : > { %v3237_v4 = vadd.f32 %v4196_v15, %v3236_v3 }
 0x63c   : > { %v4405_v5 = vpop.f32.mrf.mxu0 }
 0x63d   : > { %v3241_v8 = vmax.f32 %v3237_v4, 0.0 }
 0x63f   : > { %v3242_v10 = vpack.c.bf16 %v3241_v8, %v3240_v6 }
 0x641   : > { %4423 = vmatmul.mubr.bf16.vlgmr.msra.gmra.mxu1 %v3242_v10 }
 0x642   : > { %4439 = vmatpush3.bf16.msra.mxu1 %v5031_v9  ;;  %4442 = vmatprep.mubr.msk.bf16.mxu1 %vm5441_vm2, %v5440_v7 }
 0x643   : > { %4440 = vmatprep.subr.bf16.mxu1 %v5440_v7 }
 0x646   : > { %4441 = vmatpush3.bf16.msra.mxu1 %v5032_v11 }
 0x647   : > { %4446 = vmatprep.subr.bf16.mxu1 %v5440_v7 }
 0x649   : > { %4443 = vmatmul.mubr.msk.bf16.vlgmr.msra.gmra.mxu1 %vm3468_vm3, %v3000_v39 }
 0x64a   : > { %4450 = vmatprep.mubr.msk.bf16.mxu1 %vm5441_vm2, %v5440_v7  ;;  %4447 = vmatpush3.bf16.msra.mxu1 %v5037_v32 }
 0x64b   : > { %4448 = vmatprep.subr.bf16.mxu1 %v5440_v7  ;;  %v4220_v7 = vld [vmem:[#allocation12] ss:$0 sm:$0xff] }
 0x64e   : > { %4449 = vmatpush3.bf16.msra.mxu1 %v5038_v33 }
 0x701   : > { %v3348_v18 = vpop.f32.mrf.mxu1 }
 0x702   : > { %v3349_v20 = vadd.f32 %v4205_v17, %v3348_v18 }
 0x703   : > { %v4424_v19 = vpop.f32.mrf.mxu1 }
 0x704   : > { %v3355_v25 = vmax.f32 %v3349_v20, 0.0 }
 0x705   : > { %v3351_v21 = vpop.f32.mrf.mxu1 }
 0x706   : > { %v3352_v22 = vadd.f32 %v4205_v17, %v3351_v21 }
 0x707   : > { %v4425_v23 = vpop.f32.mrf.mxu1 }
 0x708   : > { %v3356_v26 = vmax.f32 %v3352_v22, 0.0 }
 0x709   : > { %v3506_v27 = vpop.f32.mrf.mxu1 }
 0x70a   : > { %v3357_v28 = vpack.c.bf16 %v3356_v26, %v3355_v25  ;;  %v3507_v42 = vadd.f32 %v4220_v7, %v3506_v27 }
 0x70b   : > { %v4444_v29 = vpop.f32.mrf.mxu1 }
 0x70c   : > { %4435 = vmatmul.mubr.msk.bf16.vlgmr.msra.gmra.mxu0 %vm3397_vm4, %v3357_v28 }
 0x70d   : > { %v3509_v30 = vpop.f32.mrf.mxu1 }
 0x70e   : > { %v3510_v47 = vadd.f32 %v4220_v7, %v3509_v30 }
 0x70f   : > { %v4445_v31 = vpop.f32.mrf.mxu1 }
 0x7cc   : > { %v3435_v35 = vpop.f32.mrf.mxu0 }
 0x7cd   : > { %v3436_v36 = vadd.f32 %v4214_v34, %v3435_v35 }
 0x7ce   : > { %v4436_v50 = vpop.f32.mrf.mxu0 }
 0x7cf   : > { %v3442_v14 = vmax.f32 %v3436_v36, 0.0 }
 0x7d0   : > { %v3438_v48 = vpop.f32.mrf.mxu0 }
 0x7d1   : > { %v3439_v52 = vadd.f32 %v4214_v34, %v3438_v48 }
 0x7d2   : > { %v4437_v37 = vpop.f32.mrf.mxu0 }
 0x7d3   : > { %v3443_v38 = vmax.f32 %v3439_v52, 0.0 }
 0x7d5   : > { %v3444_v39 = vpack.c.bf16 %v3443_v38, %v3442_v14 }
 0x7d7   : > { %4451 = vmatmul.mubr.msk.bf16.vlgmr.msra.gmra.mxu1 %vm3468_vm3, %v3444_v39 }
 0x897   : > { %v3573_v41 = vpop.f32.mrf.mxu1 }
 0x898   : > { %v3574_v44 = vadd.f32 %v4224_v40, %v3573_v41 }
 0x899   : > { %v4452_v24 = vpop.f32.mrf.mxu1 }
 0x89a   : > { %v3580_v45 = vadd.f32 %v3574_v44, %v3507_v42 }
 0x89b   : > { %v3576_v46 = vpop.f32.mrf.mxu1 }
 0x89c   : > { %3583 = vst.msk [vmem:[%s5996_s30] sm:$0xff] %vm3582_vm5, %v3580_v45  ;;  %v3577_v49 = vadd.f32 %v4224_v40, %v3576_v46  ;;  %3591 = sbr.rel (!%p6120_p5) target bundleno = 2248 (0x8c8), region = 156 }
 0x89d   : > { %v4453_v51 = vpop.f32.mrf.mxu1 }
 0x89e   : > { %v3581_v55 = vadd.f32 %v3577_v49, %v3510_v47 }
 0x8a0   : > { %3584 = vst.msk [vmem:[%s5996_s30 + $0x8] sm:$0xff] %vm3582_vm5, %v3581_v55 }
 0x8a1   : > { %s6126_s2 = smov (!%p3594_p10, %s3593_s2), 2 }
 0x8a2   : > { %s4230_s3 = sshll.u32 %s6126_s2, 7 }
 0x8a3   : > { %p4233_p8 = scmp.eq.s32.totalorder %s4230_s3, 0 }
 0x8a4   : > { %s6013_s13 = sshrl.u32 (!%p4233_p8), %s6126_s2, 1 }
 0x8a5   : > { %3602 = sbr.rel (%p4233_p8) target bundleno = 2248 (0x8c8), region = 160  ;;  %p4234_p11 = scmp.le.s32.totalorder (!%p4233_p8), %s6013_s13, 0 }
 0x8aa   : > { %3769 = sbr.rel (%p4234_p11) target bundleno = 2231 (0x8b7), region = 237  ;;  %s5391_s25 = smov (!%p4234_p11), %s6007_s24  }
 0x8ab   : > { %s5395_s27 = smov (!%p4234_p11), %s5996_s30   ;;  %s5399_s28 = smov (!%p4234_p11), 0  }
 0x8ac   : > { %s5403_s0 = smov (!%p4234_p11), 0  }
 0x8af LB: >> { %v3667_v58 = vld [vmem:[%s5397_s27] sm:$0xff]  ;;  %v3669_v59 = vld [vmem:[%s5397_s27 + $0x8] sm:$0xff]  ;;  %s3671_s26 = sadd.s32 1, %s5401_s28  ;;  %s3661_s0 = sadd.s32 1, %s5405_s0   ;;  %s5405_s0 = sphi %s5403_s0, %s3661_s0   ;;  %s5401_s28 = sphi %s5399_s28, %s5400_s28   ;;  %s5397_s27 = sphi %s5395_s27, %s3676_s27   ;;  %s5393_s25 = sphi %s5391_s25, %s3677_s25  }
 0x8b0   : >> { %3668 = vst [vmem:[%s5393_s25] sm:$0xff] %v3667_v58  ;;  %3670 = vst [vmem:[%s5393_s25 + $0x8] sm:$0xff] %v3669_v59  ;;  %p3672_p12 = scmp.ge.s32.totalorder %s3671_s26, %s6013_s13  ;;  %p3660_p13 = scmp.ge.s32.totalorder %s3661_s0, %s6013_s13 }
 0x8b2   : >> { %s6128_s26 = smov (%p3672_p12, %s3671_s26), 0  ;;  %3663 = sbr.rel (!%p3660_p13) target bundleno = 2223 (0x8af), region = 243 }
 0x8b3   : >> { %s4235_s23 = sshll.u32 %s6128_s26, 4  ;;  %s5400_s28 = smov %s6128_s26  }
 0x8b4   : >> { %s3676_s27 = scalar_lea.vmem %s5996_s30, %s4235_s23 [#allocation18]   ;;  %s3677_s25 = scalar_lea.vmem %s6007_s24, %s4235_s23  }
 0x8b7 PF: > { %s6023_s7 = sand.u32 1, %s6126_s2   ;;  %s4246_s4 = sshll.u32 %s6013_s13, 4 }
 0x8b8   : > { %s3682_s6 = scalar_lea.vmem %s5996_s30, %s4246_s4 [#allocation18]   ;;  %s3684_s5 = scalar_lea.vmem %s6007_s24, %s4246_s4  }
 0x8b9   : > { %p4240_p9 = scmp.le.s32.totalorder %s6023_s7, 0 }
 0x8ba   : > { %s5407_s29 = smov (!%p4240_p9), %s3684_s5   ;;  %s5411_s1 = smov (!%p4240_p9), %s3682_s6  }
 0x8bb   : > { %3783 = sbr.rel (%p4240_p9) target bundleno = 2248 (0x8c8), region = 248  ;;  %s5415_s3 = smov (!%p4240_p9), 0  }
 0x8bc   : > { %s5419_s25 = smov (!%p4240_p9), 0  }
 0x8c0 LB: >> { %v3694_v43 = vld [vmem:[%s5413_s1] sm:$0xff]  ;;  %s3696_s2 = sadd.s32 1, %s5417_s3  ;;  %s3688_s25 = sadd.s32 1, %s5421_s25   ;;  %s5421_s25 = sphi %s5419_s25, %s3688_s25   ;;  %s5417_s3 = sphi %s5415_s3, %s5416_s3   ;;  %s5413_s1 = sphi %s5411_s1, %s3701_s1   ;;  %s5409_s29 = sphi %s5407_s29, %s3702_s29  }
 0x8c1   : >> { %3695 = vst [vmem:[%s5409_s29] sm:$0xff] %v3694_v43  ;;  %p3697_p0 = scmp.ge.s32.totalorder %s3696_s2, %s6023_s7  ;;  %p3687_p4 = scmp.ge.s32.totalorder %s3688_s25, %s6023_s7 }
 0x8c3   : >> { %s6130_s2 = smov (%p3697_p0, %s3696_s2), 0  ;;  %3690 = sbr.rel (!%p3687_p4) target bundleno = 2240 (0x8c0), region = 254 }
 0x8c4   : >> { %s4241_s30 = sshll.u32 %s6130_s2, 3  ;;  %s5416_s3 = smov %s6130_s2  }
 0x8c5   : >> { %s3701_s1 = scalar_lea.vmem %s3682_s6, %s4241_s30 [#allocation18]   ;;  %s3702_s29 = scalar_lea.vmem %s3684_s5, %s4241_s30  }
 0x8c8 PF: > { %s6122_s24 = sld [smem:[#allocation26_spill]] }
 0x8c9   : > { %s6123_s4 = sld [smem:[#allocation25_spill]] }
 0x8ca   : > { %s6124_s30 = sld [smem:[#allocation27_spill]] }
 0x8ce   : > { %p36_p6 = scmp.ge.s32.totalorder %s6122_s24, 4  }
 0x8d0   :  { %38 = sbr.rel (!%p36_p6) target bundleno = 19 (0x13), region = 265 }
 0x8d5   :  { %3718 = vsyncpa [#allocation3], 1 }
 0x8d6   :  { %3720 = vsyncpa [#allocation3 + $0x1], 1 }
 0x8d7   :  { %3721 = vsyncpa [#allocation5], 1 }
 0x8d8   :  { %3722 = vsyncpa [#allocation8], 1 }
 0x8d9   :  { %3723 = vsyncpa [#allocation11], 1 }
 0x8da   :  { %3724 = vsyncpa [#allocation14], 1 }
 0x8db   :  { %3725 = vsyncpa [#allocation17], 1 }

</bundles_post_ra>
